<compile_context>
chip_gen: v6e
topology: v6e:2x2x1
jax: 0.10.0
libtpu: 0.0.40
codegen_flags: <defaults>
</compile_context>

<pallas_src>
import functools

import numpy as np
import jax
import jax.numpy as jnp
from jax.experimental import pallas as pl
from jax.experimental.pallas import tpu as pltpu


# ---------------------------------------------------------------------------
# Parameter setup (replicates transition('lmu', N) + cont2discrete bilinear),
# done in float64 on the host.
# ---------------------------------------------------------------------------
def hippo_legt_params(N, dt=1.0):
    Q = np.arange(N, dtype=np.float64)
    R = (2.0 * Q + 1.0)[:, None]
    j, i = np.meshgrid(Q, Q)
    A = np.where(i < j, -1.0, (-1.0) ** (i - j + 1)) * R     # transition('lmu', N)
    B = (-1.0) ** Q[:, None] * R
    I = np.eye(N)
    ima = I - 0.5 * dt * A
    Ad = np.linalg.solve(ima, I + 0.5 * dt * A)              # bilinear (Tustin)
    Bd = np.linalg.solve(ima, dt * B).squeeze(-1)
    # TODO(synk): eval_matrix (scipy.special.eval_legendre) only feeds reconstruct(),
    # not forward(); not built here.
    return Ad, Bd


# ---------------------------------------------------------------------------
# Fused blocked-scan operator (float64 host precompute, cast to f32).
#
#   Pmat[:, j*N:(j+1)*N] = (Ad^T)^(j+1)                          shape (N, T*N)
#   Wmat[s, j*N:(j+1)*N] = Bd @ (Ad^T)^(j-s)  for s <= j else 0  shape (T, T*N)
#   Op = [Wmat ; Pmat]                                           shape (T+N, T*N)
#
# For a chunk with incoming state c_in (M, N) and inputs F (M, T):
#   Out = [F | c_in] @ Op                                        shape (M, T*N)
#   Out[:, j*N:(j+1)*N] == state after consuming f_j             (j = 0..T-1)
# ---------------------------------------------------------------------------
def build_chunk_operator(Ad, Bd, T):
    N = Ad.shape[0]
    At = Ad.T
    P = np.zeros((T + 1, N, N))
    P[0] = np.eye(N)
    for k in range(1, T + 1):
        P[k] = P[k - 1] @ At
    Pmat = np.concatenate([P[jj + 1] for jj in range(T)], axis=1)     # (N, T*N)
    BP = np.einsum('n,knm->km', Bd, P)                                # (T+1, N)
    W = np.zeros((T, T, N))
    for jj in range(T):
        for s in range(jj + 1):
            W[s, jj] = BP[jj - s]
    Wmat = W.reshape(T, T * N)                                        # (T, T*N)
    Op = np.concatenate([Wmat, Pmat], axis=0)                         # (T+N, T*N)
    return Op.astype(np.float32)


# ---------------------------------------------------------------------------
# Pallas kernel: one grid step = one (M tile, T-timestep chunk).
# Grid = (M_pad // TM, L_pad // T), dims = ("parallel", "arbitrary").
# ---------------------------------------------------------------------------
def _hippo_chunk_kernel(x_ref, op_ref, o_ref, lhs_ref, *, T, N):
    # x_ref:   (TM, T)       chunk inputs, time along lanes
    # op_ref:  (T+N, T*N)    fused [Wmat ; Pmat] operator (grid-invariant, resident)
    # o_ref:   (TM, T*N)     lane-dense output slab (leading grid dim squeezed)
    # lhs_ref: (TM, T+N)     VMEM scratch: [F_chunk | carried state], f32
    @pl.when(pl.program_id(1) == 0)
    def _():
        # New M tile (or very first step): zero the carried state columns.
        lhs_ref[:, T:] = jnp.zeros((lhs_ref.shape[0], N), lhs_ref.dtype)

    # Lane-aligned copy of the input chunk into the first T columns of the LHS.
    lhs_ref[:, :T] = x_ref[...]

    # Single fused K = T+N contraction, written straight into the output block.
    o_ref[...] = jnp.dot(
        lhs_ref[...], op_ref[...],
        precision=jax.lax.Precision.DEFAULT,
        preferred_element_type=jnp.float32,
    ).astype(o_ref.dtype)

    # Carry = state after the last timestep of the chunk, read back from o_ref
    # (avoids keeping a (TM, T*N) f32 temporary live in VMEM).
    lhs_ref[:, T:] = o_ref[:, (T - 1) * N:]


def _pick_tm(M):
    # Multiple of 8, capped at 256 to bound the (TM, T*N) output block; aim for
    # >= 2 tiles along the 'parallel' M axis so both v7x TensorCores get work.
    # For tiny M the kernel is overhead-bound regardless (review guidance).
    if M <= 8:
        return 8
    half = ((((M + 1) // 2) + 7) // 8) * 8
    return min(256, max(8, half))


def hippo_legt_forward(inputs, op, *, N, T):
    """inputs: (d0, d1, L) float32 -> output (L, d0, d1, N) float32."""
    d0, d1, L = inputs.shape
    M = d0 * d1
    TN = T * N
    assert TN % 128 == 0, "T*N must be a multiple of 128 for lane-dense output"

    L_pad = pl.cdiv(L, T) * T
    G = L_pad // T
    TM = _pick_tm(M)
    M_pad = pl.cdiv(M, TM) * TM

    x = inputs.reshape(M, L).astype(jnp.float32)
    x = jnp.pad(x, ((0, M_pad - M), (0, L_pad - L)))                  # (M_pad, L_pad)

    kernel = functools.partial(_hippo_chunk_kernel, T=T, N=N)

    # VMEM footprint at TM=256, T=128, N=32 (f32, double-buffered blocks):
    #   x 0.25 MiB + Op 5 MiB + out 8 MiB + lhs scratch 0.25 MiB  ~= 13.5 MiB
    # (the grid-invariant Op is never re-DMA'd but still double-buffered by
    #  default; acceptable within the 32 MiB budget on all generations).
    out = pl.pallas_call(
        kernel,
        out_shape=jax.ShapeDtypeStruct((G, M_pad, TN), jnp.float32),
        grid_spec=pltpu.PrefetchScalarGridSpec(
            num_scalar_prefetch=0,
            grid=(M_pad // TM, G),
            in_specs=[
                pl.BlockSpec((TM, T), lambda m, t: (m, t)),       # x chunk
                pl.BlockSpec((T + N, TN), lambda m, t: (0, 0)),   # fused operator
            ],
            out_specs=pl.BlockSpec((None, TM, TN), lambda m, t: (t, m, 0)),
            scratch_shapes=[pltpu.VMEM((TM, T + N), jnp.float32)],
        ),
        compiler_params=pltpu.CompilerParams(
            dimension_semantics=("parallel", "arbitrary"),
            vmem_limit_bytes=32 * 1024 * 1024,
        ),
    )(x, op)

    # Recover the PyTorch (L, d0, d1, N) time-major layout.  Under jit this
    # slice+reshape+transpose fuses into a single relayout copy; consumers that
    # can take channel-major data should consume the raw (G, M_pad, T*N) slab
    # instead (the relayout roughly doubles output HBM traffic).
    out = out[:, :M, :].reshape(G, M, T, N)
    out = jnp.transpose(out, (0, 2, 1, 3)).reshape(L_pad, d0, d1, N)
    return out[:L]


# ---------------------------------------------------------------------------
# Independent float64 numpy reference (mirrors the PyTorch loop).
# ---------------------------------------------------------------------------
def hippo_legt_ref_np(inputs_np, Ad, Bd):
    d0, d1, L = inputs_np.shape
    N = Ad.shape[0]
    c = np.zeros((d0, d1, N))
    outs = np.zeros((L, d0, d1, N))
    for t in range(L):
        f = inputs_np[:, :, t]
        c = c @ Ad.T + f[..., None] * Bd[None, None, :]
        outs[t] = c
    return outs


if __name__ == "__main__":
    # small shapes: batch d0=2, channels d1=4, seq L=256, HiPPO order N=32
    d0, d1, N, L = 2, 4, 32, 256
    dt = 1.0 / L                                      # "roughly inverse to length"
    # Timesteps produced per grid step.  T=128 keeps grid-step overhead low on
    # v6e/v7x (output-bandwidth bound); on v5e, T=64 halves Wmat FLOPs/VMEM if
    # the kernel is still MXU-bound there.
    T = 128 if L >= 128 else L

    Ad, Bd = hippo_legt_params(N, dt=dt)              # float64
    op = jnp.asarray(build_chunk_operator(Ad, Bd, T))  # (T+N, T*N) f32

    key = jax.random.PRNGKey(0)
    inputs = jax.random.normal(key, (d0, d1, L), dtype=jnp.float32)

    fwd = jax.jit(functools.partial(hippo_legt_forward, N=N, T=T))
    out = jax.block_until_ready(fwd(inputs, op))

    ref = hippo_legt_ref_np(np.asarray(inputs, dtype=np.float64), Ad, Bd)

    assert out.shape == (L, d0, d1, N), out.shape
    # Tolerance sized for DEFAULT-precision (bf16-input) MXU contraction over
    # K = T+N = 160 terms; with precision=HIGHEST this kernel matches at 2e-3.
    np.testing.assert_allclose(np.asarray(out), ref, rtol=5e-2, atol=5e-2)
    print("KERNEL_OK")
</pallas_src>

<mosaic_0001>
module attributes {stable_mosaic.version = 11 : i64} {
  func.func @_hippo_chunk_kernel(%arg0: i32, %arg1: i32, %arg2: memref<8x128xf32, #tpu.memory_space<vmem>>, %arg3: memref<160x4096xf32, #tpu.memory_space<vmem>>, %arg4: memref<1x8x4096xf32, #tpu.memory_space<vmem>>, %arg5: memref<8x160xf32, #tpu.memory_space<vmem>>) attributes {dimension_semantics = [#tpu.dimension_semantics<parallel>, #tpu.dimension_semantics<arbitrary>], iteration_bounds = array<i64: 1, 2>, scalar_prefetch = 0 : i64, scratch_operands = 1 : i64, tpu.core_type = #tpu.core_type<tc>, window_params = [{transform_indices = @transform_0, window_bounds = array<i64: 8, 128>}, {pipeline_mode = #tpu.pipeline_mode<synchronous>, transform_indices = @transform_1, window_bounds = array<i64: 160, 4096>}, {transform_indices = @transform_2, window_bounds = array<i64: 1, 8, 4096>}]} {
    %c0_i32 = arith.constant 0 : i32
    %0 = arith.cmpi eq, %arg1, %c0_i32 : i32
    %1 = arith.extui %0 : i1 to i32
    %c0_i32_0 = arith.constant 0 : i32
    %2 = arith.cmpi ne, %1, %c0_i32_0 : i32
    scf.if %2 {
      %cst_14 = arith.constant 0.000000e+00 : f32
      %14 = vector.broadcast %cst_14 : f32 to vector<8x32xf32>
      %c0_15 = arith.constant 0 : index
      %c128_16 = arith.constant 128 : index
      %15 = vector.load %arg5[%c0_15, %c128_16] : memref<8x160xf32, #tpu.memory_space<vmem>>, vector<8x32xf32>
      tpu.vector_store %arg5[%c0_15, %c128_16], %14 {strides = array<i32>} : memref<8x160xf32, #tpu.memory_space<vmem>>, vector<8x32xf32>,
    } else {
    }
    %c0 = arith.constant 0 : index
    %c0_1 = arith.constant 0 : index
    %3 = vector.load %arg2[%c0, %c0_1] : memref<8x128xf32, #tpu.memory_space<vmem>>, vector<8x128xf32>
    %c0_2 = arith.constant 0 : index
    %c0_3 = arith.constant 0 : index
    %4 = vector.load %arg5[%c0_2, %c0_3] : memref<8x160xf32, #tpu.memory_space<vmem>>, vector<8x128xf32>
    tpu.vector_store %arg5[%c0_2, %c0_3], %3 {strides = array<i32>} : memref<8x160xf32, #tpu.memory_space<vmem>>, vector<8x128xf32>,
    %c0_4 = arith.constant 0 : index
    %c0_5 = arith.constant 0 : index
    %5 = vector.load %arg5[%c0_4, %c0_5] : memref<8x160xf32, #tpu.memory_space<vmem>>, vector<8x160xf32>
    %c0_6 = arith.constant 0 : index
    %c0_7 = arith.constant 0 : index
    %6 = vector.load %arg3[%c0_6, %c0_7] : memref<160x4096xf32, #tpu.memory_space<vmem>>, vector<160x4096xf32>
    %cst = arith.constant dense<0.000000e+00> : vector<8x4096xf32>
    %7 = tpu.matmul %5, %6, %cst {dimension_numbers = #tpu.dot_dimension_numbers<[1], [0], [0], [1], [0, 0, 1, 1], [], []>} : vector<8x160xf32>, vector<160x4096xf32>, vector<8x4096xf32> -> vector<8x4096xf32>
    %c0_8 = arith.constant 0 : index
    %c0_9 = arith.constant 0 : index
    %c0_10 = arith.constant 0 : index
    %8 = vector.load %arg4[%c0_8, %c0_9, %c0_10] : memref<1x8x4096xf32, #tpu.memory_space<vmem>>, vector<1x8x4096xf32>
    %9 = vector.shape_cast %8 : vector<1x8x4096xf32> to vector<8x4096xf32>
    %10 = vector.shape_cast %7 : vector<8x4096xf32> to vector<1x8x4096xf32>
    tpu.vector_store %arg4[%c0_8, %c0_9, %c0_10], %10 {strides = array<i32>} : memref<1x8x4096xf32, #tpu.memory_space<vmem>>, vector<1x8x4096xf32>,
    %c0_11 = arith.constant 0 : index
    %c0_12 = arith.constant 0 : index
    %c4064 = arith.constant 4064 : index
    %11 = vector.load %arg4[%c0_11, %c0_12, %c4064] : memref<1x8x4096xf32, #tpu.memory_space<vmem>>, vector<1x8x32xf32>
    %12 = vector.shape_cast %11 : vector<1x8x32xf32> to vector<8x32xf32>
    %c0_13 = arith.constant 0 : index
    %c128 = arith.constant 128 : index
    %13 = vector.load %arg5[%c0_13, %c128] : memref<8x160xf32, #tpu.memory_space<vmem>>, vector<8x32xf32>
    tpu.vector_store %arg5[%c0_13, %c128], %12 {strides = array<i32>} : memref<8x160xf32, #tpu.memory_space<vmem>>, vector<8x32xf32>,
    return
  }
  func.func @transform_0(%arg0: i32, %arg1: i32) -> (i32, i32) {
    %c0_i32 = arith.constant 0 : i32
    return %arg0, %arg1 : i32, i32
  }
  func.func @transform_1(%arg0: i32, %arg1: i32) -> (i32, i32) {
    %c0_i32 = arith.constant 0 : i32
    %c0_i32_0 = arith.constant 0 : i32
    %c0_i32_1 = arith.constant 0 : i32
    return %c0_i32, %c0_i32_0 : i32, i32
  }
  func.func @transform_2(%arg0: i32, %arg1: i32) -> (i32, i32, i32) {
    %c0_i32 = arith.constant 0 : i32
    %c0_i32_0 = arith.constant 0 : i32
    return %arg1, %arg0, %c0_i32 : i32, i32, i32
  }
}

</mosaic_0001>

<bundles_post_ra>
// kernel: hippo_legt_forward.1
= control target key start
LH: loop header
LB: loop body
LE: loop exit
PB: predicated region body
PF: predicated region fallthrough
CT: control target
= control target key end

     0   :  { %7 = vsyncpa [#allocation4], 0  ;;  %s2269_s9 = smov 0   ;;  %s2271_s10 = smov 0   ;;  %s2428_s0 = inlined_call_operand.vmem [shape: f32[8,256], index: 0, kind: input, shape index: {}]   ;;  %s2429_s1 = inlined_call_operand.hbm [shape: f32[160,4096], index: 1, kind: input, shape index: {}]   ;;  %s2430_s2 = inlined_call_operand.vmem [shape: f32[2,8,4096], index: 2, kind: output, shape index: {}]  }
   0x1   :  { %s2273_s11 = smov 0  }
   0x2 LB: > { %s2122_s12 = sadd.s32 4294967295, %s2247_s11   ;;  %s22_s13 = sadd.s32 1, %s2243_s10  ;;  %s2247_s11 = sphi %s2273_s11, %s13_s11   ;;  %s2243_s10 = sphi %s2271_s10, %s2434_s10   ;;  %s2239_s9 = sphi %s2269_s9, %s2433_s9  }
   0x3   : > { %p23_p0 = scmp.ge.s32.totalorder %s22_s13, 2  ;;  %p2124_p1 = scmp.ge.s32.totalorder %s2247_s11, 1 }
   0x4   : > { %p107_p2 = scmp.lt.s32.totalorder %s2247_s11, 3  ;;  %p2294_p4 = scmp.eq.s32.totalorder %s2122_s12, 0 }
   0x5   : > { %s2436_s13 = smov (%p23_p0, %s22_s13), 0  ;;  %s2249_s16 = smov [#allocation3]  }
   0x6   : > { %p2290_p3 = pnand %p2124_p1, %p107_p2  ;;  %s119_s17 = sshll.u32 %s2249_s16, 4  ;;  %s120_s17 = int_to_ptr.vmem [resolvable:$true] %s119_s17 }
   0x7   : > { %s2206_s18 = scalar_lea.vmem %s120_s17, 81920  ;;  %p2214_p11 = scmp.lt.s32.totalorder %s120_s17, %s120_s17 }
   0x8   : > { %p2156_p5 = pneg %p2290_p3  ;;  %p2207_p8 = scmp.ne.s32.totalorder %s120_s17, %s2206_s18 }
   0x9   : > { %p2215_p12 = scmp.lt.s32.totalorder %s2206_s18, %s2206_s18 }
   0xa   : > { %p2157_p6 = pnand %p2294_p4, %p2156_p5 }
   0xb   : > { %p2216_p13 = por %p2215_p12, %p2214_p11 }
   0xc   : > { %p2197_p7 = pneg %p2157_p6 }
   0xe   : > { %p2209_p9 = pnand %p2207_p8, %p2197_p7 }
  0x10   : > { %p2210_p10 = pneg %p2209_p9 }
  0x12   : > { %p2217_p0 = pnand %p2216_p13, %p2210_p10 }
  0x14   : > { %2220 = shalt.err (!%p2217_p0)
}
  0x15   : > { %s2250_s19 = smov 4096   ;;  %s2251_s20 = smov 256  }
  0x16   : > { %2159 = dma.hbm_to_vmem [thread:$0]  (!%p2157_p6), %s2429_s1, 81920, %s120_s17, [#allocation4], %s2250_s19, %s2250_s19, %s2251_s20  }
  0x17   : > { %146 = sbr.rel (%p2290_p3) target bundleno = 671 (0x29f), region = 28 }
  0x1c   : > { %2234 = dma.done.wait (%p2294_p4), [#allocation4], 81920  }
  0x1d   : > { %2236 = vsyncadd (%p2294_p4), [#allocation4], 4294885376  ;;  %p177_p1 = scmp.lt.s32.totalorder %s2239_s9, 1  ;;  %p2132_p2 = scmp.ne.s32.totalorder %s2239_s9, 0 }
  0x1f   : > { %s178_s23 = scalar_select %p177_p1, %s2239_s9, 1 }
  0x20   : > { %195 = sbr.rel (%p2132_p2) target bundleno = 39 (0x27), region = 36 }
  0x21   : > { %s2129_s24 = sshll.u32 %s178_s23, 3  ;;  %s2151_s25 = sshll.u32 %s178_s23, 8 }
  0x22   : > { %s2316_s28 = scalar_lea.vmem %s2428_s0, %s2129_s24  ;;  %s2321_s3 = scalar_lea.vmem %s2430_s2, %s2151_s25 }
  0x25   : > { %vm196_vm0 = vcmask 261120   ;;  %v2252_v0 = vmov 0.0  }
  0x26   : > { %197 = vst.msk [vmem:[#allocation2 + $0x8] sm:$0xff] %vm196_vm0, %v2252_v0 }
  0x27 PF: > { %v685_v1 = vld [vmem:[#allocation3 + $0xf18] sm:$0xff]  ;;  %v684_v2 = vld [vmem:[#allocation3 + $0xf10] sm:$0xff]  ;;  %vm842_vm1 = vcmask 261120   ;;  %v683_v47 = vld [vmem:[#allocation3 + $0xf08] sm:$0xff]  ;;  %s2253_s4 = smov 32  }
  0x28   : > { %v653_v3 = vld [vmem:[#allocation3 + $0xe18] sm:$0xff]  ;;  %917 = vmatprep.subr.mxu1 %v685_v1  ;;  %v652_v4 = vld [vmem:[#allocation3 + $0xe10] sm:$0xff]  ;;  %v682_v48 = vld [vmem:[#allocation3 + $0xf00] sm:$0xff]  ;;  %846 = vmatprep.subr.mxu0 %v683_v47 }
  0x29   : > { %918 = vmatpush1.msra.mxu1 %v684_v2  ;;  %v621_v5 = vld [vmem:[#allocation3 + $0xd18] sm:$0xff]  ;;  %v620_v6 = vld [vmem:[#allocation3 + $0xd10] sm:$0xff]  ;;  %v651_v50 = vld [vmem:[#allocation3 + $0xe08] sm:$0xff]  ;;  %847 = vmatpush1.msra.mxu0 %v682_v48 }
  0x2a   : > { %919 = vmatprep.subr.mxu1 %v653_v3  ;;  %v589_v7 = vld [vmem:[#allocation3 + $0xc18] sm:$0xff]  ;;  %v588_v8 = vld [vmem:[#allocation3 + $0xc10] sm:$0xff]  ;;  %v650_v52 = vld [vmem:[#allocation3 + $0xe00] sm:$0xff]  ;;  %848 = vmatprep.subr.mxu0 %v651_v50 }
  0x2b   : > { %920 = vmatpush1.msra.mxu1 %v652_v4  ;;  %v557_v9 = vld [vmem:[#allocation3 + $0xb18] sm:$0xff]  ;;  %v556_v10 = vld [vmem:[#allocation3 + $0xb10] sm:$0xff]  ;;  %v619_v54 = vld [vmem:[#allocation3 + $0xd08] sm:$0xff]  ;;  %849 = vmatpush1.msra.mxu0 %v650_v52 }
  0x2c   : > { %921 = vmatprep.subr.mxu1 %v621_v5  ;;  %v525_v11 = vld [vmem:[#allocation3 + $0xa18] sm:$0xff]  ;;  %v524_v12 = vld [vmem:[#allocation3 + $0xa10] sm:$0xff]  ;;  %v618_v56 = vld [vmem:[#allocation3 + $0xd00] sm:$0xff]  ;;  %850 = vmatprep.subr.mxu0 %v619_v54 }
  0x2d   : > { %922 = vmatpush1.msra.mxu1 %v620_v6  ;;  %v493_v13 = vld [vmem:[#allocation3 + $0x918] sm:$0xff]  ;;  %v492_v14 = vld [vmem:[#allocation3 + $0x910] sm:$0xff]  ;;  %v587_v58 = vld [vmem:[#allocation3 + $0xc08] sm:$0xff]  ;;  %851 = vmatpush1.msra.mxu0 %v618_v56 }
  0x2e   : > { %923 = vmatprep.subr.mxu1 %v589_v7  ;;  %v461_v15 = vld [vmem:[#allocation3 + $0x818] sm:$0xff]  ;;  %v460_v16 = vld [vmem:[#allocation3 + $0x810] sm:$0xff]  ;;  %v586_v60 = vld [vmem:[#allocation3 + $0xc00] sm:$0xff]  ;;  %852 = vmatprep.subr.mxu0 %v587_v58 }
  0x2f   : > { %924 = vmatpush1.msra.mxu1 %v588_v8  ;;  %v2324_v17 = vld [vmem:[#allocation2 + $0x8] sm:$0xff]  ;;  %v2327_v18 = vld [vmem:[%s2316_s28] sm:$0xff]  ;;  %v555_v62 = vld [vmem:[#allocation3 + $0xb08] sm:$0xff]  ;;  %853 = vmatpush1.msra.mxu0 %v586_v60 }
  0x30   : > { %925 = vmatprep.subr.mxu1 %v557_v9  ;;  %v429_v19 = vld [vmem:[#allocation3 + $0x718] sm:$0xff]  ;;  %2134 = vmatprep.mubr.msk.f32.mxu1 %vm842_vm1, %v2324_v17  ;;  %199 = vst [vmem:[#allocation2] sm:$0xff] %v2327_v18  ;;  %v428_v20 = vld [vmem:[#allocation3 + $0x710] sm:$0xff]  ;;  %v554_v0 = vld [vmem:[#allocation3 + $0xb00] sm:$0xff] }
  0x31   : > { %926 = vmatpush1.msra.mxu1 %v556_v10  ;;  %2133 = vmatprep.mubr.msk.f32.mxu0 %vm842_vm1, %v2324_v17  ;;  %v397_v21 = vld [vmem:[#allocation3 + $0x618] sm:$0xff]  ;;  %v396_v22 = vld [vmem:[#allocation3 + $0x610] sm:$0xff]  ;;  %v523_v2 = vld [vmem:[#allocation3 + $0xa08] sm:$0xff] }
  0x32   : > { %927 = vmatprep.subr.mxu1 %v525_v11  ;;  %v365_v23 = vld [vmem:[#allocation3 + $0x518] sm:$0xff]  ;;  %v364_v24 = vld [vmem:[#allocation3 + $0x510] sm:$0xff]  ;;  %854 = vmatprep.subr.mxu0 %v555_v62  ;;  %v522_v4 = vld [vmem:[#allocation3 + $0xa00] sm:$0xff] }
  0x33   : > { %928 = vmatpush1.msra.mxu1 %v524_v12  ;;  %v333_v25 = vld [vmem:[#allocation3 + $0x418] sm:$0xff]  ;;  %v332_v26 = vld [vmem:[#allocation3 + $0x410] sm:$0xff]  ;;  %855 = vmatpush1.msra.mxu0 %v554_v0  ;;  %v491_v6 = vld [vmem:[#allocation3 + $0x908] sm:$0xff] }
  0x34   : > { %929 = vmatprep.subr.mxu1 %v493_v13  ;;  %v301_v27 = vld [vmem:[#allocation3 + $0x318] sm:$0xff]  ;;  %v300_v28 = vld [vmem:[#allocation3 + $0x310] sm:$0xff]  ;;  %856 = vmatprep.subr.mxu0 %v523_v2  ;;  %v490_v8 = vld [vmem:[#allocation3 + $0x900] sm:$0xff] }
  0x35   : > { %930 = vmatpush1.msra.mxu1 %v492_v14  ;;  %v269_v29 = vld [vmem:[#allocation3 + $0x218] sm:$0xff]  ;;  %v268_v30 = vld [vmem:[#allocation3 + $0x210] sm:$0xff]  ;;  %857 = vmatpush1.msra.mxu0 %v522_v4  ;;  %v459_v10 = vld [vmem:[#allocation3 + $0x808] sm:$0xff] }
  0x36   : > { %931 = vmatprep.subr.mxu1 %v461_v15  ;;  %v237_v31 = vld [vmem:[#allocation3 + $0x118] sm:$0xff]  ;;  %v236_v32 = vld [vmem:[#allocation3 + $0x110] sm:$0xff]  ;;  %858 = vmatprep.subr.mxu0 %v491_v6  ;;  %v458_v12 = vld [vmem:[#allocation3 + $0x800] sm:$0xff] }
  0x37   : > { %932 = vmatpush1.msra.mxu1 %v460_v16  ;;  %v205_v33 = vld [vmem:[#allocation3 + $0x18] sm:$0xff]  ;;  %v204_v34 = vld [vmem:[#allocation3 + $0x10] sm:$0xff]  ;;  %859 = vmatpush1.msra.mxu0 %v490_v8  ;;  %v427_v14 = vld [vmem:[#allocation3 + $0x708] sm:$0xff] }
  0x38   : > { %933 = vmatprep.subr.mxu1 %v429_v19  ;;  %v813_v35 = vld [vmem:[#allocation3 + $0x1318] sm:$0xff]  ;;  %v812_v36 = vld [vmem:[#allocation3 + $0x1310] sm:$0xff]  ;;  %860 = vmatprep.subr.mxu0 %v459_v10  ;;  %v426_v16 = vld [vmem:[#allocation3 + $0x700] sm:$0xff] }
  0x39   : > { %934 = vmatpush1.msra.mxu1 %v428_v20  ;;  %v781_v37 = vld [vmem:[#allocation3 + $0x1218] sm:$0xff]  ;;  %v780_v38 = vld [vmem:[#allocation3 + $0x1210] sm:$0xff]  ;;  %861 = vmatpush1.msra.mxu0 %v458_v12  ;;  %v395_v20 = vld [vmem:[#allocation3 + $0x608] sm:$0xff] }
  0x3a   : > { %935 = vmatprep.subr.mxu1 %v397_v21  ;;  %v749_v39 = vld [vmem:[#allocation3 + $0x1118] sm:$0xff]  ;;  %v748_v40 = vld [vmem:[#allocation3 + $0x1110] sm:$0xff]  ;;  %862 = vmatprep.subr.mxu0 %v427_v14  ;;  %v811_v48 = vld [vmem:[#allocation3 + $0x1308] sm:$0xff] }
  0x3b   : > { %936 = vmatpush1.msra.mxu1 %v396_v22  ;;  %v717_v41 = vld [vmem:[#allocation3 + $0x1018] sm:$0xff]  ;;  %v716_v42 = vld [vmem:[#allocation3 + $0x1010] sm:$0xff]  ;;  %v394_v22 = vld [vmem:[#allocation3 + $0x600] sm:$0xff]  ;;  %863 = vmatpush1.msra.mxu0 %v426_v16 }
  0x3c   : > { %937 = vmatprep.subr.mxu1 %v365_v23  ;;  %v689_v43 = vld [vmem:[#allocation3 + $0xf38] sm:$0xff]  ;;  %v688_v44 = vld [vmem:[#allocation3 + $0xf30] sm:$0xff]  ;;  %864 = vmatprep.subr.mxu0 %v395_v20  ;;  %v810_v50 = vld [vmem:[#allocation3 + $0x1300] sm:$0xff] }
  0x3d   : > { %938 = vmatpush1.msra.mxu1 %v364_v24  ;;  %v657_v45 = vld [vmem:[#allocation3 + $0xe38] sm:$0xff]  ;;  %v656_v46 = vld [vmem:[#allocation3 + $0xe30] sm:$0xff]  ;;  %v363_v24 = vld [vmem:[#allocation3 + $0x508] sm:$0xff]  ;;  %865 = vmatpush1.msra.mxu0 %v394_v22 }
  0x3e   : > { %939 = vmatprep.subr.mxu1 %v333_v25  ;;  %v625_v49 = vld [vmem:[#allocation3 + $0xd38] sm:$0xff]  ;;  %v624_v51 = vld [vmem:[#allocation3 + $0xd30] sm:$0xff]  ;;  %866 = vmatprep.subr.mxu0 %v363_v24  ;;  %v779_v52 = vld [vmem:[#allocation3 + $0x1208] sm:$0xff] }
  0x3f   : > { %940 = vmatpush1.msra.mxu1 %v332_v26  ;;  %v593_v53 = vld [vmem:[#allocation3 + $0xc38] sm:$0xff]  ;;  %v592_v55 = vld [vmem:[#allocation3 + $0xc30] sm:$0xff]  ;;  %v362_v26 = vld [vmem:[#allocation3 + $0x500] sm:$0xff] }
  0x40   : > { %941 = vmatprep.subr.mxu1 %v301_v27  ;;  %v561_v57 = vld [vmem:[#allocation3 + $0xb38] sm:$0xff]  ;;  %v560_v59 = vld [vmem:[#allocation3 + $0xb30] sm:$0xff]  ;;  %867 = vmatpush1.msra.mxu0 %v362_v26  ;;  %v778_v54 = vld [vmem:[#allocation3 + $0x1200] sm:$0xff] }
  0x41   : > { %942 = vmatpush1.msra.mxu1 %v300_v28  ;;  %v529_v61 = vld [vmem:[#allocation3 + $0xa38] sm:$0xff]  ;;  %v528_v63 = vld [vmem:[#allocation3 + $0xa30] sm:$0xff]  ;;  %v331_v28 = vld [vmem:[#allocation3 + $0x408] sm:$0xff] }
  0x42   : > { %943 = vmatprep.subr.mxu1 %v269_v29  ;;  %v497_v1 = vld [vmem:[#allocation3 + $0x938] sm:$0xff]  ;;  %v496_v3 = vld [vmem:[#allocation3 + $0x930] sm:$0xff]  ;;  %868 = vmatprep.subr.mxu0 %v331_v28  ;;  %v747_v56 = vld [vmem:[#allocation3 + $0x1108] sm:$0xff] }
  0x43   : > { %944 = vmatpush1.msra.mxu1 %v268_v30  ;;  %v465_v5 = vld [vmem:[#allocation3 + $0x838] sm:$0xff]  ;;  %v464_v7 = vld [vmem:[#allocation3 + $0x830] sm:$0xff]  ;;  %v330_v30 = vld [vmem:[#allocation3 + $0x400] sm:$0xff] }
  0x44   : > { %945 = vmatprep.subr.mxu1 %v237_v31  ;;  %v433_v9 = vld [vmem:[#allocation3 + $0x738] sm:$0xff]  ;;  %v432_v11 = vld [vmem:[#allocation3 + $0x730] sm:$0xff]  ;;  %869 = vmatpush1.msra.mxu0 %v330_v30  ;;  %v746_v58 = vld [vmem:[#allocation3 + $0x1100] sm:$0xff] }
  0x45   : > { %946 = vmatpush1.msra.mxu1 %v236_v32  ;;  %v401_v13 = vld [vmem:[#allocation3 + $0x638] sm:$0xff]  ;;  %v400_v15 = vld [vmem:[#allocation3 + $0x630] sm:$0xff]  ;;  %v299_v32 = vld [vmem:[#allocation3 + $0x308] sm:$0xff] }
  0x46   : > { %947 = vmatprep.subr.mxu1 %v205_v33  ;;  %v369_v19 = vld [vmem:[#allocation3 + $0x538] sm:$0xff]  ;;  %v368_v21 = vld [vmem:[#allocation3 + $0x530] sm:$0xff]  ;;  %870 = vmatprep.subr.mxu0 %v299_v32  ;;  %v715_v62 = vld [vmem:[#allocation3 + $0x1008] sm:$0xff] }
  0x47   : > { %948 = vmatpush1.msra.mxu1 %v204_v34  ;;  %v337_v23 = vld [vmem:[#allocation3 + $0x438] sm:$0xff]  ;;  %v336_v25 = vld [vmem:[#allocation3 + $0x430] sm:$0xff]  ;;  %v298_v34 = vld [vmem:[#allocation3 + $0x300] sm:$0xff] }
  0x48   : > { %973 = vmatprep.subr.mxu1 %v813_v35  ;;  %v305_v27 = vld [vmem:[#allocation3 + $0x338] sm:$0xff]  ;;  %v304_v29 = vld [vmem:[#allocation3 + $0x330] sm:$0xff]  ;;  %871 = vmatpush1.msra.mxu0 %v298_v34  ;;  %v714_v0 = vld [vmem:[#allocation3 + $0x1000] sm:$0xff] }
  0x49   : > { %974 = vmatpush2.msra.mxu1 %v812_v36  ;;  %v273_v31 = vld [vmem:[#allocation3 + $0x238] sm:$0xff]  ;;  %v272_v33 = vld [vmem:[#allocation3 + $0x230] sm:$0xff]  ;;  %v267_v36 = vld [vmem:[#allocation3 + $0x208] sm:$0xff] }
  0x4a   : > { %975 = vmatprep.subr.mxu1 %v781_v37  ;;  %v241_v35 = vld [vmem:[#allocation3 + $0x138] sm:$0xff]  ;;  %v240_v37 = vld [vmem:[#allocation3 + $0x130] sm:$0xff]  ;;  %872 = vmatprep.subr.mxu0 %v267_v36  ;;  %v687_v2 = vld [vmem:[#allocation3 + $0xf28] sm:$0xff] }
  0x4b   : > { %976 = vmatpush2.msra.mxu1 %v780_v38  ;;  %v266_v38 = vld [vmem:[#allocation3 + $0x200] sm:$0xff]  ;;  %v785_v47 = vld [vmem:[#allocation3 + $0x1238] sm:$0xff]  ;;  %v692_v60 = vld [vmem:[#allocation3 + $0xf50] sm:$0xff] }
  0x4c   : > { %977 = vmatprep.subr.mxu1 %v749_v39  ;;  %v209_v39 = vld [vmem:[#allocation3 + $0x38] sm:$0xff]  ;;  %873 = vmatpush1.msra.mxu0 %v266_v38  ;;  %v596_v6 = vld [vmem:[#allocation3 + $0xc50] sm:$0xff] }
  0x4d   : > { %978 = vmatpush2.msra.mxu1 %v748_v40  ;;  %v235_v40 = vld [vmem:[#allocation3 + $0x108] sm:$0xff]  ;;  %v597_v4 = vld [vmem:[#allocation3 + $0xc58] sm:$0xff]  ;;  %v564_v10 = vld [vmem:[#allocation3 + $0xb50] sm:$0xff] }
  0x4e   : > { %979 = vmatprep.subr.mxu1 %v717_v41  ;;  %v208_v41 = vld [vmem:[#allocation3 + $0x30] sm:$0xff]  ;;  %874 = vmatprep.subr.mxu0 %v235_v40  ;;  %v565_v8 = vld [vmem:[#allocation3 + $0xb58] sm:$0xff] }
  0x4f   : > { %980 = vmatpush2.msra.mxu1 %v716_v42  ;;  %v234_v42 = vld [vmem:[#allocation3 + $0x100] sm:$0xff]  ;;  %v533_v12 = vld [vmem:[#allocation3 + $0xa58] sm:$0xff]  ;;  %v532_v14 = vld [vmem:[#allocation3 + $0xa50] sm:$0xff] }
  0x50   : > { %982 = vmatmul.mubr.f32.vlgmr.msra.gmra.mxu1 %v2327_v18  ;;  %1059 = vmatprep.subr.mxu1 %v689_v43  ;;  %v817_v43 = vld [vmem:[#allocation3 + $0x1338] sm:$0xff]  ;;  %v500_v20 = vld [vmem:[#allocation3 + $0x950] sm:$0xff] }
  0x51   : > { %1060 = vmatpush1.msra.mxu1 %v688_v44  ;;  %2136 = vmatprep.mubr.msk.f32.mxu1 %vm842_vm1, %v2324_v17  ;;  %v203_v44 = vld [vmem:[#allocation3 + $0x8] sm:$0xff]  ;;  %v501_v16 = vld [vmem:[#allocation3 + $0x958] sm:$0xff]  ;;  %v468_v24 = vld [vmem:[#allocation3 + $0x850] sm:$0xff] }
  0x52   : > { %1061 = vmatprep.subr.mxu1 %v657_v45  ;;  %v816_v45 = vld [vmem:[#allocation3 + $0x1330] sm:$0xff]  ;;  %875 = vmatpush1.msra.mxu0 %v234_v42  ;;  %v469_v22 = vld [vmem:[#allocation3 + $0x858] sm:$0xff] }
  0x53   : > { %1062 = vmatpush1.msra.mxu1 %v656_v46  ;;  %v202_v46 = vld [vmem:[#allocation3] sm:$0xff]  ;;  %876 = vmatprep.subr.mxu0 %v203_v44  ;;  %v437_v26 = vld [vmem:[#allocation3 + $0x758] sm:$0xff]  ;;  %v436_v28 = vld [vmem:[#allocation3 + $0x750] sm:$0xff] }
  0x54   : > { %1063 = vmatprep.subr.mxu1 %v625_v49  ;;  %v784_v49 = vld [vmem:[#allocation3 + $0x1230] sm:$0xff]  ;;  %877 = vmatpush1.msra.mxu0 %v202_v46  ;;  %v405_v30 = vld [vmem:[#allocation3 + $0x658] sm:$0xff] }
  0x55   : > { %1064 = vmatpush1.msra.mxu1 %v624_v51  ;;  %v753_v51 = vld [vmem:[#allocation3 + $0x1138] sm:$0xff]  ;;  %902 = vmatprep.subr.mxu0 %v811_v48  ;;  %v404_v32 = vld [vmem:[#allocation3 + $0x650] sm:$0xff] }
  0x56   : > { %1065 = vmatprep.subr.mxu1 %v593_v53  ;;  %v752_v53 = vld [vmem:[#allocation3 + $0x1130] sm:$0xff]  ;;  %903 = vmatpush2.msra.mxu0 %v810_v50  ;;  %v373_v34 = vld [vmem:[#allocation3 + $0x558] sm:$0xff] }
  0x57   : > { %1066 = vmatpush1.msra.mxu1 %v592_v55  ;;  %v721_v55 = vld [vmem:[#allocation3 + $0x1038] sm:$0xff]  ;;  %904 = vmatprep.subr.mxu0 %v779_v52  ;;  %v372_v36 = vld [vmem:[#allocation3 + $0x550] sm:$0xff] }
  0x58   : > { %1067 = vmatprep.subr.mxu1 %v561_v57  ;;  %v720_v57 = vld [vmem:[#allocation3 + $0x1030] sm:$0xff]  ;;  %905 = vmatpush2.msra.mxu0 %v778_v54  ;;  %v341_v38 = vld [vmem:[#allocation3 + $0x458] sm:$0xff] }
  0x59   : > { %1068 = vmatpush1.msra.mxu1 %v560_v59  ;;  %v693_v59 = vld [vmem:[#allocation3 + $0xf58] sm:$0xff]  ;;  %906 = vmatprep.subr.mxu0 %v747_v56  ;;  %v340_v40 = vld [vmem:[#allocation3 + $0x450] sm:$0xff] }
  0x5a   : > { %1069 = vmatprep.subr.mxu1 %v529_v61  ;;  %v661_v61 = vld [vmem:[#allocation3 + $0xe58] sm:$0xff]  ;;  %907 = vmatpush2.msra.mxu0 %v746_v58  ;;  %v308_v44 = vld [vmem:[#allocation3 + $0x350] sm:$0xff] }
  0x5b   : > { %1070 = vmatpush1.msra.mxu1 %v528_v63  ;;  %v660_v63 = vld [vmem:[#allocation3 + $0xe50] sm:$0xff]  ;;  %908 = vmatprep.subr.mxu0 %v715_v62  ;;  %v309_v42 = vld [vmem:[#allocation3 + $0x358] sm:$0xff] }
  0x5c   : > { %1071 = vmatprep.subr.mxu1 %v497_v1  ;;  %v629_v1 = vld [vmem:[#allocation3 + $0xd58] sm:$0xff]  ;;  %909 = vmatpush2.msra.mxu0 %v714_v0  ;;  %v276_v48 = vld [vmem:[#allocation3 + $0x250] sm:$0xff] }
  0x5d   : > { %1072 = vmatpush1.msra.mxu1 %v496_v3  ;;  %v628_v3 = vld [vmem:[#allocation3 + $0xd50] sm:$0xff]  ;;  %988 = vmatprep.subr.mxu0 %v687_v2  ;;  %v277_v46 = vld [vmem:[#allocation3 + $0x258] sm:$0xff] }
  0x5e   : > { %1073 = vmatprep.subr.mxu1 %v465_v5  ;;  %v686_v5 = vld [vmem:[#allocation3 + $0xf20] sm:$0xff]  ;;  %911 = vmatmul.mubr.f32.vlgmr.msra.gmra.mxu0 %v2327_v18  ;;  %v245_v50 = vld [vmem:[#allocation3 + $0x158] sm:$0xff]  ;;  %v244_v52 = vld [vmem:[#allocation3 + $0x150] sm:$0xff] }
  0x5f   : > { %1074 = vmatpush1.msra.mxu1 %v464_v7  ;;  %v655_v7 = vld [vmem:[#allocation3 + $0xe28] sm:$0xff]  ;;  %989 = vmatpush1.msra.mxu0 %v686_v5  ;;  %v213_v54 = vld [vmem:[#allocation3 + $0x58] sm:$0xff]  ;;  %v212_v56 = vld [vmem:[#allocation3 + $0x50] sm:$0xff] }
  0x60   : > { %1075 = vmatprep.subr.mxu1 %v433_v9  ;;  %v654_v9 = vld [vmem:[#allocation3 + $0xe20] sm:$0xff]  ;;  %990 = vmatprep.subr.mxu0 %v655_v7  ;;  %v821_v58 = vld [vmem:[#allocation3 + $0x1358] sm:$0xff]  ;;  %v788_v0 = vld [vmem:[#allocation3 + $0x1250] sm:$0xff] }
  0x61   : > { %1076 = vmatpush1.msra.mxu1 %v432_v11  ;;  %v623_v11 = vld [vmem:[#allocation3 + $0xd28] sm:$0xff]  ;;  %991 = vmatpush1.msra.mxu0 %v654_v9  ;;  %v789_v62 = vld [vmem:[#allocation3 + $0x1258] sm:$0xff]  ;;  %v814_v7 = vld [vmem:[#allocation3 + $0x1320] sm:$0xff] }
  0x62   : > { %1077 = vmatprep.subr.mxu1 %v401_v13  ;;  %v622_v13 = vld [vmem:[#allocation3 + $0xd20] sm:$0xff]  ;;  %992 = vmatprep.subr.mxu0 %v623_v11  ;;  %v757_v2 = vld [vmem:[#allocation3 + $0x1158] sm:$0xff]  ;;  %v815_v5 = vld [vmem:[#allocation3 + $0x1328] sm:$0xff] }
  0x63   : > { %1078 = vmatpush1.msra.mxu1 %v400_v15  ;;  %v591_v15 = vld [vmem:[#allocation3 + $0xc28] sm:$0xff]  ;;  %993 = vmatpush1.msra.mxu0 %v622_v13  ;;  %v696_v11 = vld [vmem:[#allocation3 + $0xf70] sm:$0xff]  ;;  %v782_v13 = vld [vmem:[#allocation3 + $0x1220] sm:$0xff] }
  0x64   : > { %1079 = vmatprep.subr.mxu1 %v369_v19  ;;  %v590_v19 = vld [vmem:[#allocation3 + $0xc20] sm:$0xff]  ;;  %994 = vmatprep.subr.mxu0 %v591_v15  ;;  %v783_v9 = vld [vmem:[#allocation3 + $0x1228] sm:$0xff] }
  0x65   : > { %1080 = vmatpush1.msra.mxu1 %v368_v21  ;;  %v559_v21 = vld [vmem:[#allocation3 + $0xb28] sm:$0xff]  ;;  %995 = vmatpush1.msra.mxu0 %v590_v19  ;;  %v750_v19 = vld [vmem:[#allocation3 + $0x1120] sm:$0xff] }
  0x66   : > { %1081 = vmatprep.subr.mxu1 %v337_v23  ;;  %v558_v23 = vld [vmem:[#allocation3 + $0xb20] sm:$0xff]  ;;  %996 = vmatprep.subr.mxu0 %v559_v21  ;;  %v751_v15 = vld [vmem:[#allocation3 + $0x1128] sm:$0xff] }
  0x67   : > { %1082 = vmatpush1.msra.mxu1 %v336_v25  ;;  %v527_v25 = vld [vmem:[#allocation3 + $0xa28] sm:$0xff]  ;;  %997 = vmatpush1.msra.mxu0 %v558_v23  ;;  %v718_v23 = vld [vmem:[#allocation3 + $0x1020] sm:$0xff] }
  0x68   : > { %1083 = vmatprep.subr.mxu1 %v305_v27  ;;  %v526_v27 = vld [vmem:[#allocation3 + $0xa20] sm:$0xff]  ;;  %998 = vmatprep.subr.mxu0 %v527_v25  ;;  %v719_v21 = vld [vmem:[#allocation3 + $0x1028] sm:$0xff]  ;;  %v569_v25 = vld [vmem:[#allocation3 + $0xb78] sm:$0xff] }
  0x69   : > { %1084 = vmatpush1.msra.mxu1 %v304_v29  ;;  %v495_v29 = vld [vmem:[#allocation3 + $0x928] sm:$0xff]  ;;  %999 = vmatpush1.msra.mxu0 %v526_v27  ;;  %v568_v27 = vld [vmem:[#allocation3 + $0xb70] sm:$0xff] }
  0x6a   : > { %1085 = vmatprep.subr.mxu1 %v273_v31  ;;  %v494_v31 = vld [vmem:[#allocation3 + $0x920] sm:$0xff]  ;;  %1000 = vmatprep.subr.mxu0 %v495_v29 }
  0x6b   : > { %1086 = vmatpush1.msra.mxu1 %v272_v33  ;;  %v463_v33 = vld [vmem:[#allocation3 + $0x828] sm:$0xff]  ;;  %1001 = vmatpush1.msra.mxu0 %v494_v31  ;;  %v690_v29 = vld [vmem:[#allocation3 + $0xf40] sm:$0xff] }
  0x6c   : > { %1087 = vmatprep.subr.mxu1 %v241_v35  ;;  %v462_v35 = vld [vmem:[#allocation3 + $0x820] sm:$0xff]  ;;  %1002 = vmatprep.subr.mxu0 %v463_v33  ;;  %v659_v31 = vld [vmem:[#allocation3 + $0xe48] sm:$0xff] }
  0x6d   : > { %1088 = vmatpush1.msra.mxu1 %v240_v37  ;;  %v431_v37 = vld [vmem:[#allocation3 + $0x728] sm:$0xff]  ;;  %1003 = vmatpush1.msra.mxu0 %v462_v35  ;;  %v658_v33 = vld [vmem:[#allocation3 + $0xe40] sm:$0xff] }
  0x6e   : > { %1089 = vmatprep.subr.mxu1 %v209_v39  ;;  %v430_v39 = vld [vmem:[#allocation3 + $0x720] sm:$0xff]  ;;  %1004 = vmatprep.subr.mxu0 %v431_v37  ;;  %v627_v35 = vld [vmem:[#allocation3 + $0xd48] sm:$0xff] }
  0x6f   : > { %1090 = vmatpush1.msra.mxu1 %v208_v41  ;;  %v399_v41 = vld [vmem:[#allocation3 + $0x628] sm:$0xff]  ;;  %1005 = vmatpush1.msra.mxu0 %v430_v39  ;;  %v626_v37 = vld [vmem:[#allocation3 + $0xd40] sm:$0xff]  ;;  %v441_v39 = vld [vmem:[#allocation3 + $0x778] sm:$0xff] }
  0x70   : > { %1115 = vmatprep.subr.mxu1 %v817_v43  ;;  %v398_v43 = vld [vmem:[#allocation3 + $0x620] sm:$0xff]  ;;  %1006 = vmatprep.subr.mxu0 %v399_v41  ;;  %v440_v41 = vld [vmem:[#allocation3 + $0x770] sm:$0xff] }
  0x71   : > { %1116 = vmatpush2.msra.mxu1 %v816_v45  ;;  %v367_v45 = vld [vmem:[#allocation3 + $0x528] sm:$0xff]  ;;  %1007 = vmatpush1.msra.mxu0 %v398_v43  ;;  %v562_v43 = vld [vmem:[#allocation3 + $0xb40] sm:$0xff] }
  0x72   : > { %1117 = vmatprep.subr.mxu1 %v785_v47  ;;  %v366_v47 = vld [vmem:[#allocation3 + $0x520] sm:$0xff]  ;;  %1008 = vmatprep.subr.mxu0 %v367_v45  ;;  %v531_v45 = vld [vmem:[#allocation3 + $0xa48] sm:$0xff] }
  0x73   : > { %1118 = vmatpush2.msra.mxu1 %v784_v49  ;;  %v335_v49 = vld [vmem:[#allocation3 + $0x428] sm:$0xff]  ;;  %1009 = vmatpush1.msra.mxu0 %v366_v47  ;;  %v530_v47 = vld [vmem:[#allocation3 + $0xa40] sm:$0xff] }
  0x74   : > { %1119 = vmatprep.subr.mxu1 %v753_v51  ;;  %v334_v51 = vld [vmem:[#allocation3 + $0x420] sm:$0xff]  ;;  %1010 = vmatprep.subr.mxu0 %v335_v49  ;;  %v499_v49 = vld [vmem:[#allocation3 + $0x948] sm:$0xff] }
  0x75   : > { %1120 = vmatpush2.msra.mxu1 %v752_v53  ;;  %v303_v53 = vld [vmem:[#allocation3 + $0x328] sm:$0xff]  ;;  %1011 = vmatpush1.msra.mxu0 %v334_v51  ;;  %v498_v51 = vld [vmem:[#allocation3 + $0x940] sm:$0xff] }
  0x76   : > { %1121 = vmatprep.subr.mxu1 %v721_v55  ;;  %v302_v55 = vld [vmem:[#allocation3 + $0x320] sm:$0xff]  ;;  %1012 = vmatprep.subr.mxu0 %v303_v53  ;;  %v467_v53 = vld [vmem:[#allocation3 + $0x848] sm:$0xff] }
  0x77   : > { %1122 = vmatpush2.msra.mxu1 %v720_v57  ;;  %v271_v57 = vld [vmem:[#allocation3 + $0x228] sm:$0xff]  ;;  %1013 = vmatpush1.msra.mxu0 %v302_v55  ;;  %v466_v55 = vld [vmem:[#allocation3 + $0x840] sm:$0xff] }
  0x78   : > { %1124 = vmatmul.mubr.f32.vlgmr.msra.gmra.mxu1 %v2327_v18  ;;  %1201 = vmatprep.subr.mxu1 %v693_v59  ;;  %v270_v59 = vld [vmem:[#allocation3 + $0x220] sm:$0xff] }
  0x79   : > { %1202 = vmatpush1.msra.mxu1 %v692_v60  ;;  %2138 = vmatprep.mubr.msk.f32.mxu1 %vm842_vm1, %v2324_v17  ;;  %v820_v60 = vld [vmem:[#allocation3 + $0x1350] sm:$0xff] }
  0x7a   : > { %1203 = vmatprep.subr.mxu1 %v661_v61  ;;  %v239_v61 = vld [vmem:[#allocation3 + $0x128] sm:$0xff]  ;;  %1014 = vmatprep.subr.mxu0 %v271_v57 }
  0x7b   : > { %1204 = vmatpush1.msra.mxu1 %v660_v63  ;;  %v238_v63 = vld [vmem:[#allocation3 + $0x120] sm:$0xff]  ;;  %1015 = vmatpush1.msra.mxu0 %v270_v59  ;;  %v435_v57 = vld [vmem:[#allocation3 + $0x748] sm:$0xff] }
  0x7c   : > { %1205 = vmatprep.subr.mxu1 %v629_v1  ;;  %v207_v1 = vld [vmem:[#allocation3 + $0x28] sm:$0xff]  ;;  %1016 = vmatprep.subr.mxu0 %v239_v61  ;;  %v434_v59 = vld [vmem:[#allocation3 + $0x740] sm:$0xff] }
  0x7d   : > { %1206 = vmatpush1.msra.mxu1 %v628_v3  ;;  %v206_v3 = vld [vmem:[#allocation3 + $0x20] sm:$0xff]  ;;  %1017 = vmatpush1.msra.mxu0 %v238_v63  ;;  %v403_v61 = vld [vmem:[#allocation3 + $0x648] sm:$0xff] }
  0x7e   : > { %1207 = vmatprep.subr.mxu1 %v597_v4  ;;  %v756_v4 = vld [vmem:[#allocation3 + $0x1150] sm:$0xff]  ;;  %1018 = vmatprep.subr.mxu0 %v207_v1  ;;  %v402_v63 = vld [vmem:[#allocation3 + $0x640] sm:$0xff]  ;;  %v371_v1 = vld [vmem:[#allocation3 + $0x548] sm:$0xff] }
  0x7f   : > { %1208 = vmatpush1.msra.mxu1 %v596_v6  ;;  %v725_v6 = vld [vmem:[#allocation3 + $0x1058] sm:$0xff]  ;;  %1019 = vmatpush1.msra.mxu0 %v206_v3  ;;  %v370_v3 = vld [vmem:[#allocation3 + $0x540] sm:$0xff] }
  0x80   : > { %1209 = vmatprep.subr.mxu1 %v565_v8  ;;  %v724_v8 = vld [vmem:[#allocation3 + $0x1050] sm:$0xff]  ;;  %1044 = vmatprep.subr.mxu0 %v815_v5  ;;  %v339_v5 = vld [vmem:[#allocation3 + $0x448] sm:$0xff] }
  0x81   : > { %1210 = vmatpush1.msra.mxu1 %v564_v10  ;;  %v697_v10 = vld [vmem:[#allocation3 + $0xf78] sm:$0xff]  ;;  %1045 = vmatpush2.msra.mxu0 %v814_v7  ;;  %v338_v7 = vld [vmem:[#allocation3 + $0x440] sm:$0xff] }
  0x82   : > { %1211 = vmatprep.subr.mxu1 %v533_v12  ;;  %v665_v12 = vld [vmem:[#allocation3 + $0xe78] sm:$0xff]  ;;  %1046 = vmatprep.subr.mxu0 %v783_v9  ;;  %v307_v9 = vld [vmem:[#allocation3 + $0x348] sm:$0xff] }
  0x83   : > { %1212 = vmatpush1.msra.mxu1 %v532_v14  ;;  %v664_v14 = vld [vmem:[#allocation3 + $0xe70] sm:$0xff]  ;;  %1047 = vmatpush2.msra.mxu0 %v782_v13  ;;  %v275_v13 = vld [vmem:[#allocation3 + $0x248] sm:$0xff] }
  0x84   : > { %1213 = vmatprep.subr.mxu1 %v501_v16  ;;  %v633_v16 = vld [vmem:[#allocation3 + $0xd78] sm:$0xff]  ;;  %1048 = vmatprep.subr.mxu0 %v751_v15  ;;  %v274_v15 = vld [vmem:[#allocation3 + $0x240] sm:$0xff] }
  0x85   : > { %1214 = vmatpush1.msra.mxu1 %v500_v20  ;;  %v632_v20 = vld [vmem:[#allocation3 + $0xd70] sm:$0xff]  ;;  %1049 = vmatpush2.msra.mxu0 %v750_v19  ;;  %v243_v19 = vld [vmem:[#allocation3 + $0x148] sm:$0xff] }
  0x86   : > { %1215 = vmatprep.subr.mxu1 %v469_v22  ;;  %v601_v22 = vld [vmem:[#allocation3 + $0xc78] sm:$0xff]  ;;  %1050 = vmatprep.subr.mxu0 %v719_v21  ;;  %v242_v21 = vld [vmem:[#allocation3 + $0x140] sm:$0xff] }
  0x87   : > { %1216 = vmatpush1.msra.mxu1 %v468_v24  ;;  %v600_v24 = vld [vmem:[#allocation3 + $0xc70] sm:$0xff]  ;;  %1051 = vmatpush2.msra.mxu0 %v718_v23  ;;  %v211_v23 = vld [vmem:[#allocation3 + $0x48] sm:$0xff] }
  0x88   : > { %1217 = vmatprep.subr.mxu1 %v437_v26  ;;  %v691_v26 = vld [vmem:[#allocation3 + $0xf48] sm:$0xff]  ;;  %2135 = vmatprep.mubr.msk.f32.mxu0 %vm842_vm1, %v2324_v17 }
  0x89   : > { %1218 = vmatpush1.msra.mxu1 %v436_v28  ;;  %v537_v28 = vld [vmem:[#allocation3 + $0xa78] sm:$0xff]  ;;  %1130 = vmatprep.subr.mxu0 %v691_v26 }
  0x8a   : > { %1219 = vmatprep.subr.mxu1 %v405_v30  ;;  %v536_v30 = vld [vmem:[#allocation3 + $0xa70] sm:$0xff]  ;;  %1053 = vmatmul.mubr.f32.vlgmr.msra.gmra.mxu0 %v2327_v18  ;;  %v669_v26 = vld [vmem:[#allocation3 + $0xe98] sm:$0xff] }
  0x8b   : > { %1220 = vmatpush1.msra.mxu1 %v404_v32  ;;  %v505_v32 = vld [vmem:[#allocation3 + $0x978] sm:$0xff]  ;;  %1131 = vmatpush1.msra.mxu0 %v690_v29  ;;  %v668_v29 = vld [vmem:[#allocation3 + $0xe90] sm:$0xff] }
  0x8c   : > { %1221 = vmatprep.subr.mxu1 %v373_v34  ;;  %v504_v34 = vld [vmem:[#allocation3 + $0x970] sm:$0xff]  ;;  %1132 = vmatprep.subr.mxu0 %v659_v31  ;;  %v637_v31 = vld [vmem:[#allocation3 + $0xd98] sm:$0xff] }
  0x8d   : > { %1222 = vmatpush1.msra.mxu1 %v372_v36  ;;  %v473_v36 = vld [vmem:[#allocation3 + $0x878] sm:$0xff]  ;;  %1133 = vmatpush1.msra.mxu0 %v658_v33  ;;  %v818_v33 = vld [vmem:[#allocation3 + $0x1340] sm:$0xff] }
  0x8e   : > { %1223 = vmatprep.subr.mxu1 %v341_v38  ;;  %v595_v38 = vld [vmem:[#allocation3 + $0xc48] sm:$0xff]  ;;  %1134 = vmatprep.subr.mxu0 %v627_v35 }
  0x8f   : > { %1224 = vmatpush1.msra.mxu1 %v340_v40  ;;  %v594_v40 = vld [vmem:[#allocation3 + $0xc40] sm:$0xff]  ;;  %1135 = vmatpush1.msra.mxu0 %v626_v37  ;;  %v787_v35 = vld [vmem:[#allocation3 + $0x1248] sm:$0xff] }
  0x90   : > { %1225 = vmatprep.subr.mxu1 %v309_v42  ;;  %v409_v42 = vld [vmem:[#allocation3 + $0x678] sm:$0xff]  ;;  %1136 = vmatprep.subr.mxu0 %v595_v38  ;;  %v786_v37 = vld [vmem:[#allocation3 + $0x1240] sm:$0xff]  ;;  %v755_v38 = vld [vmem:[#allocation3 + $0x1148] sm:$0xff] }
  0x91   : > { %1226 = vmatpush1.msra.mxu1 %v308_v44  ;;  %v408_v44 = vld [vmem:[#allocation3 + $0x670] sm:$0xff]  ;;  %1137 = vmatpush1.msra.mxu0 %v594_v40  ;;  %v754_v40 = vld [vmem:[#allocation3 + $0x1140] sm:$0xff] }
  0x92   : > { %1227 = vmatprep.subr.mxu1 %v277_v46  ;;  %v377_v46 = vld [vmem:[#allocation3 + $0x578] sm:$0xff] }
  0x93   : > { %1228 = vmatpush1.msra.mxu1 %v276_v48  ;;  %v376_v48 = vld [vmem:[#allocation3 + $0x570] sm:$0xff] }
  0x94   : > { %1229 = vmatprep.subr.mxu1 %v245_v50  ;;  %v345_v50 = vld [vmem:[#allocation3 + $0x478] sm:$0xff] }
  0x95   : > { %1230 = vmatpush1.msra.mxu1 %v244_v52  ;;  %v344_v52 = vld [vmem:[#allocation3 + $0x470] sm:$0xff] }
  0x96   : > { %1231 = vmatprep.subr.mxu1 %v213_v54  ;;  %v313_v54 = vld [vmem:[#allocation3 + $0x378] sm:$0xff] }
  0x97   : > { %1232 = vmatpush1.msra.mxu1 %v212_v56  ;;  %v312_v56 = vld [vmem:[#allocation3 + $0x370] sm:$0xff] }
  0x98   : > { %1257 = vmatprep.subr.mxu1 %v821_v58  ;;  %v281_v58 = vld [vmem:[#allocation3 + $0x278] sm:$0xff] }
  0x99   : > { %1258 = vmatpush2.msra.mxu1 %v820_v60  ;;  %v280_v60 = vld [vmem:[#allocation3 + $0x270] sm:$0xff] }
  0x9a   : > { %1259 = vmatprep.subr.mxu1 %v789_v62  ;;  %v249_v62 = vld [vmem:[#allocation3 + $0x178] sm:$0xff] }
  0x9b   : > { %1260 = vmatpush2.msra.mxu1 %v788_v0  ;;  %v248_v0 = vld [vmem:[#allocation3 + $0x170] sm:$0xff] }
  0x9c   : > { %1261 = vmatprep.subr.mxu1 %v757_v2  ;;  %v217_v2 = vld [vmem:[#allocation3 + $0x78] sm:$0xff] }
  0x9d   : > { %1262 = vmatpush2.msra.mxu1 %v756_v4  ;;  %v216_v4 = vld [vmem:[#allocation3 + $0x70] sm:$0xff] }
  0x9e   : > { %1263 = vmatprep.subr.mxu1 %v725_v6  ;;  %v825_v6 = vld [vmem:[#allocation3 + $0x1378] sm:$0xff] }
  0x9f   : > { %1264 = vmatpush2.msra.mxu1 %v724_v8  ;;  %v824_v8 = vld [vmem:[#allocation3 + $0x1370] sm:$0xff] }
  0xa0   : > { %1266 = vmatmul.mubr.f32.vlgmr.msra.gmra.mxu1 %v2327_v18  ;;  %1343 = vmatprep.subr.mxu1 %v697_v10  ;;  %v563_v18 = vld [vmem:[#allocation3 + $0xb48] sm:$0xff]  ;;  %v793_v10 = vld [vmem:[#allocation3 + $0x1278] sm:$0xff] }
  0xa1   : > { %1344 = vmatpush1.msra.mxu1 %v696_v11  ;;  %2140 = vmatprep.mubr.msk.f32.mxu1 %vm842_vm1, %v2324_v17  ;;  %v472_v17 = vld [vmem:[#allocation3 + $0x870] sm:$0xff]  ;;  %v306_v11 = vld [vmem:[#allocation3 + $0x340] sm:$0xff] }
  0xa2   : > { %1345 = vmatprep.subr.mxu1 %v665_v12  ;;  %1138 = vmatprep.subr.mxu0 %v563_v18  ;;  %v792_v12 = vld [vmem:[#allocation3 + $0x1270] sm:$0xff]  ;;  %v723_v18 = vld [vmem:[#allocation3 + $0x1048] sm:$0xff] }
  0xa3   : > { %1346 = vmatpush1.msra.mxu1 %v664_v14  ;;  %1139 = vmatpush1.msra.mxu0 %v562_v43  ;;  %v761_v14 = vld [vmem:[#allocation3 + $0x1178] sm:$0xff]  ;;  %v722_v43 = vld [vmem:[#allocation3 + $0x1040] sm:$0xff] }
  0xa4   : > { %1347 = vmatprep.subr.mxu1 %v633_v16  ;;  %1140 = vmatprep.subr.mxu0 %v531_v45  ;;  %v760_v16 = vld [vmem:[#allocation3 + $0x1170] sm:$0xff]  ;;  %v509_v45 = vld [vmem:[#allocation3 + $0x998] sm:$0xff] }
  0xa5   : > { %1348 = vmatpush1.msra.mxu1 %v632_v20  ;;  %1141 = vmatpush1.msra.mxu0 %v530_v47  ;;  %v729_v20 = vld [vmem:[#allocation3 + $0x1078] sm:$0xff]  ;;  %v508_v47 = vld [vmem:[#allocation3 + $0x990] sm:$0xff] }
  0xa6   : > { %1349 = vmatprep.subr.mxu1 %v601_v22  ;;  %1142 = vmatprep.subr.mxu0 %v499_v49  ;;  %v728_v22 = vld [vmem:[#allocation3 + $0x1070] sm:$0xff]  ;;  %v694_v49 = vld [vmem:[#allocation3 + $0xf60] sm:$0xff] }
  0xa7   : > { %1350 = vmatpush1.msra.mxu1 %v600_v24  ;;  %1143 = vmatpush1.msra.mxu0 %v498_v51  ;;  %v701_v24 = vld [vmem:[#allocation3 + $0xf98] sm:$0xff]  ;;  %v663_v51 = vld [vmem:[#allocation3 + $0xe68] sm:$0xff] }
  0xa8   : > { %1351 = vmatprep.subr.mxu1 %v569_v25  ;;  %1144 = vmatprep.subr.mxu0 %v467_v53  ;;  %v700_v25 = vld [vmem:[#allocation3 + $0xf90] sm:$0xff]  ;;  %v662_v53 = vld [vmem:[#allocation3 + $0xe60] sm:$0xff] }
  0xa9   : > { %1352 = vmatpush1.msra.mxu1 %v568_v27  ;;  %1145 = vmatpush1.msra.mxu0 %v466_v55  ;;  %v210_v27 = vld [vmem:[#allocation3 + $0x40] sm:$0xff]  ;;  %v631_v55 = vld [vmem:[#allocation3 + $0xd68] sm:$0xff] }
  0xaa   : > { %1353 = vmatprep.subr.mxu1 %v537_v28  ;;  %1146 = vmatprep.subr.mxu0 %v435_v57  ;;  %v2347_v28 = vld [vmem:[#allocation2] sm:$0xff]  ;;  %v630_v57 = vld [vmem:[#allocation3 + $0xd60] sm:$0xff] }
  0xab   : > { %1354 = vmatpush1.msra.mxu1 %v536_v30  ;;  %1147 = vmatpush1.msra.mxu0 %v434_v59  ;;  %v819_v30 = vld [vmem:[#allocation3 + $0x1348] sm:$0xff] }
  0xac   : > { %1355 = vmatprep.subr.mxu1 %v505_v32  ;;  %1148 = vmatprep.subr.mxu0 %v403_v61  ;;  %v2350_v32 = vld [vmem:[#allocation2 + $0x8] sm:$0xff]  ;;  %v599_v59 = vld [vmem:[#allocation3 + $0xc68] sm:$0xff]  ;;  %v598_v61 = vld [vmem:[#allocation3 + $0xc60] sm:$0xff] }
  0xad   : > { %1356 = vmatpush1.msra.mxu1 %v504_v34  ;;  %1149 = vmatpush1.msra.mxu0 %v402_v63  ;;  %v636_v34 = vld [vmem:[#allocation3 + $0xd90] sm:$0xff]  ;;  %v567_v63 = vld [vmem:[#allocation3 + $0xb68] sm:$0xff] }
  0xae   : > { %1357 = vmatprep.subr.mxu1 %v473_v36  ;;  %1150 = vmatprep.subr.mxu0 %v371_v1  ;;  %v605_v36 = vld [vmem:[#allocation3 + $0xc98] sm:$0xff]  ;;  %v566_v1 = vld [vmem:[#allocation3 + $0xb60] sm:$0xff] }
  0xaf   : > { %1358 = vmatpush1.msra.mxu1 %v472_v17  ;;  %1151 = vmatpush1.msra.mxu0 %v370_v3  ;;  %v604_v17 = vld [vmem:[#allocation3 + $0xc90] sm:$0xff]  ;;  %v535_v3 = vld [vmem:[#allocation3 + $0xa68] sm:$0xff] }
  0xb0   : > { %1359 = vmatprep.subr.mxu1 %v441_v39  ;;  %1152 = vmatprep.subr.mxu0 %v339_v5  ;;  %v573_v39 = vld [vmem:[#allocation3 + $0xb98] sm:$0xff]  ;;  %v534_v5 = vld [vmem:[#allocation3 + $0xa60] sm:$0xff] }
  0xb1   : > { %1360 = vmatpush1.msra.mxu1 %v440_v41  ;;  %1153 = vmatpush1.msra.mxu0 %v338_v7  ;;  %v572_v41 = vld [vmem:[#allocation3 + $0xb90] sm:$0xff]  ;;  %v503_v7 = vld [vmem:[#allocation3 + $0x968] sm:$0xff] }
  0xb2   : > { %1361 = vmatprep.subr.mxu1 %v409_v42  ;;  %1154 = vmatprep.subr.mxu0 %v307_v9  ;;  %v541_v42 = vld [vmem:[#allocation3 + $0xa98] sm:$0xff]  ;;  %v502_v9 = vld [vmem:[#allocation3 + $0x960] sm:$0xff] }
  0xb3   : > { %1362 = vmatpush1.msra.mxu1 %v408_v44  ;;  %1155 = vmatpush1.msra.mxu0 %v306_v11  ;;  %v540_v44 = vld [vmem:[#allocation3 + $0xa90] sm:$0xff]  ;;  %v471_v11 = vld [vmem:[#allocation3 + $0x868] sm:$0xff] }
  0xb4   : > { %1363 = vmatprep.subr.mxu1 %v377_v46  ;;  %1156 = vmatprep.subr.mxu0 %v275_v13  ;;  %v695_v46 = vld [vmem:[#allocation3 + $0xf68] sm:$0xff]  ;;  %v470_v13 = vld [vmem:[#allocation3 + $0x860] sm:$0xff] }
  0xb5   : > { %1364 = vmatpush1.msra.mxu1 %v376_v48  ;;  %1157 = vmatpush1.msra.mxu0 %v274_v15  ;;  %v477_v48 = vld [vmem:[#allocation3 + $0x898] sm:$0xff]  ;;  %v439_v15 = vld [vmem:[#allocation3 + $0x768] sm:$0xff] }
  0xb6   : > { %1365 = vmatprep.subr.mxu1 %v345_v50  ;;  %1158 = vmatprep.subr.mxu0 %v243_v19  ;;  %v476_v50 = vld [vmem:[#allocation3 + $0x890] sm:$0xff]  ;;  %v438_v19 = vld [vmem:[#allocation3 + $0x760] sm:$0xff] }
  0xb7   : > { %1366 = vmatpush1.msra.mxu1 %v344_v52  ;;  %1159 = vmatpush1.msra.mxu0 %v242_v21  ;;  %v445_v52 = vld [vmem:[#allocation3 + $0x798] sm:$0xff]  ;;  %v407_v21 = vld [vmem:[#allocation3 + $0x668] sm:$0xff] }
  0xb8   : > { %1367 = vmatprep.subr.mxu1 %v313_v54  ;;  %1160 = vmatprep.subr.mxu0 %v211_v23  ;;  %v444_v54 = vld [vmem:[#allocation3 + $0x790] sm:$0xff]  ;;  %v406_v23 = vld [vmem:[#allocation3 + $0x660] sm:$0xff] }
  0xb9   : > { %1368 = vmatpush1.msra.mxu1 %v312_v56  ;;  %1161 = vmatpush1.msra.mxu0 %v210_v27  ;;  %v413_v56 = vld [vmem:[#allocation3 + $0x698] sm:$0xff]  ;;  %v374_v27 = vld [vmem:[#allocation3 + $0x560] sm:$0xff] }
  0xba   : > { %1369 = vmatprep.subr.mxu1 %v281_v58  ;;  %1186 = vmatprep.subr.mxu0 %v819_v30  ;;  %v412_v58 = vld [vmem:[#allocation3 + $0x690] sm:$0xff]  ;;  %v343_v30 = vld [vmem:[#allocation3 + $0x468] sm:$0xff] }
  0xbb   : > { %1370 = vmatpush1.msra.mxu1 %v280_v60  ;;  %1187 = vmatpush2.msra.mxu0 %v818_v33  ;;  %v381_v60 = vld [vmem:[#allocation3 + $0x598] sm:$0xff]  ;;  %v342_v33 = vld [vmem:[#allocation3 + $0x460] sm:$0xff] }
  0xbc   : > { %1371 = vmatprep.subr.mxu1 %v249_v62  ;;  %1188 = vmatprep.subr.mxu0 %v787_v35  ;;  %v380_v62 = vld [vmem:[#allocation3 + $0x590] sm:$0xff]  ;;  %v311_v35 = vld [vmem:[#allocation3 + $0x368] sm:$0xff] }
  0xbd   : > { %1372 = vmatpush1.msra.mxu1 %v248_v0  ;;  %1189 = vmatpush2.msra.mxu0 %v786_v37  ;;  %v349_v0 = vld [vmem:[#allocation3 + $0x498] sm:$0xff]  ;;  %v310_v37 = vld [vmem:[#allocation3 + $0x360] sm:$0xff] }
  0xbe   : > { %1373 = vmatprep.subr.mxu1 %v217_v2  ;;  %1190 = vmatprep.subr.mxu0 %v755_v38  ;;  %v348_v2 = vld [vmem:[#allocation3 + $0x490] sm:$0xff]  ;;  %v279_v38 = vld [vmem:[#allocation3 + $0x268] sm:$0xff] }
  0xbf   : > { %1374 = vmatpush1.msra.mxu1 %v216_v4  ;;  %1191 = vmatpush2.msra.mxu0 %v754_v40  ;;  %v317_v4 = vld [vmem:[#allocation3 + $0x398] sm:$0xff]  ;;  %v704_v40 = vld [vmem:[#allocation3 + $0xfb0] sm:$0xff] }
  0xc0   : > { %1399 = vmatprep.subr.mxu1 %v825_v6  ;;  %1192 = vmatprep.subr.mxu0 %v723_v18  ;;  %v316_v6 = vld [vmem:[#allocation3 + $0x390] sm:$0xff]  ;;  %v278_v18 = vld [vmem:[#allocation3 + $0x260] sm:$0xff] }
  0xc1   : > { %1400 = vmatpush2.msra.mxu1 %v824_v8  ;;  %1193 = vmatpush2.msra.mxu0 %v722_v43  ;;  %v285_v8 = vld [vmem:[#allocation3 + $0x298] sm:$0xff]  ;;  %v247_v43 = vld [vmem:[#allocation3 + $0x168] sm:$0xff] }
  0xc2   : > { %1401 = vmatprep.subr.mxu1 %v793_v10  ;;  %2137 = vmatprep.mubr.msk.f32.mxu0 %vm842_vm1, %v2350_v32  ;;  %v284_v10 = vld [vmem:[#allocation3 + $0x290] sm:$0xff] }
  0xc3   : > { %1402 = vmatpush2.msra.mxu1 %v792_v12  ;;  %1272 = vmatprep.subr.mxu0 %v695_v46  ;;  %v253_v12 = vld [vmem:[#allocation3 + $0x198] sm:$0xff]  ;;  %v640_v46 = vld [vmem:[#allocation3 + $0xdb0] sm:$0xff] }
  0xc4   : > { %1403 = vmatprep.subr.mxu1 %v761_v14  ;;  %1195 = vmatmul.mubr.f32.vlgmr.msra.gmra.mxu0 %v2347_v28  ;;  %v252_v14 = vld [vmem:[#allocation3 + $0x190] sm:$0xff] }
  0xc5   : > { %1404 = vmatpush2.msra.mxu1 %v760_v16  ;;  %1273 = vmatpush1.msra.mxu0 %v694_v49  ;;  %v221_v16 = vld [vmem:[#allocation3 + $0x98] sm:$0xff]  ;;  %v214_v49 = vld [vmem:[#allocation3 + $0x60] sm:$0xff] }
  0xc6   : > { %1405 = vmatprep.subr.mxu1 %v729_v20  ;;  %1274 = vmatprep.subr.mxu0 %v663_v51  ;;  %v220_v20 = vld [vmem:[#allocation3 + $0x90] sm:$0xff]  ;;  %v823_v51 = vld [vmem:[#allocation3 + $0x1368] sm:$0xff] }
  0xc7   : > { %1406 = vmatpush2.msra.mxu1 %v728_v22  ;;  %1275 = vmatpush1.msra.mxu0 %v662_v53  ;;  %v829_v22 = vld [vmem:[#allocation3 + $0x1398] sm:$0xff]  ;;  %v822_v53 = vld [vmem:[#allocation3 + $0x1360] sm:$0xff] }
  0xc8   : > { %1408 = vmatmul.mubr.f32.vlgmr.msra.gmra.mxu1 %v2347_v28  ;;  %1485 = vmatprep.subr.mxu1 %v701_v24  ;;  %v828_v24 = vld [vmem:[#allocation3 + $0x1390] sm:$0xff] }
  0xc9   : > { %1486 = vmatpush1.msra.mxu1 %v700_v25  ;;  %2142 = vmatprep.mubr.msk.f32.mxu1 %vm842_vm1, %v2350_v32  ;;  %v375_v25 = vld [vmem:[#allocation3 + $0x568] sm:$0xff] }
  0xca   : > { %1487 = vmatprep.subr.mxu1 %v669_v26  ;;  %1276 = vmatprep.subr.mxu0 %v631_v55  ;;  %v797_v26 = vld [vmem:[#allocation3 + $0x1298] sm:$0xff]  ;;  %v791_v55 = vld [vmem:[#allocation3 + $0x1268] sm:$0xff] }
  0xcb   : > { %1488 = vmatpush1.msra.mxu1 %v668_v29  ;;  %1277 = vmatpush1.msra.mxu0 %v630_v57  ;;  %v796_v29 = vld [vmem:[#allocation3 + $0x1290] sm:$0xff]  ;;  %v790_v57 = vld [vmem:[#allocation3 + $0x1260] sm:$0xff] }
  0xcc   : > { %1489 = vmatprep.subr.mxu1 %v637_v31  ;;  %1278 = vmatprep.subr.mxu0 %v599_v59  ;;  %v765_v31 = vld [vmem:[#allocation3 + $0x1198] sm:$0xff]  ;;  %v759_v59 = vld [vmem:[#allocation3 + $0x1168] sm:$0xff] }
  0xcd   : > { %1490 = vmatpush1.msra.mxu1 %v636_v34  ;;  %1279 = vmatpush1.msra.mxu0 %v598_v61  ;;  %v764_v34 = vld [vmem:[#allocation3 + $0x1190] sm:$0xff]  ;;  %v758_v61 = vld [vmem:[#allocation3 + $0x1160] sm:$0xff] }
  0xce   : > { %1491 = vmatprep.subr.mxu1 %v605_v36  ;;  %1280 = vmatprep.subr.mxu0 %v567_v63  ;;  %v733_v36 = vld [vmem:[#allocation3 + $0x1098] sm:$0xff]  ;;  %v727_v63 = vld [vmem:[#allocation3 + $0x1068] sm:$0xff] }
  0xcf   : > { %1492 = vmatpush1.msra.mxu1 %v604_v17  ;;  %1281 = vmatpush1.msra.mxu0 %v566_v1  ;;  %v732_v17 = vld [vmem:[#allocation3 + $0x1090] sm:$0xff]  ;;  %v726_v1 = vld [vmem:[#allocation3 + $0x1060] sm:$0xff] }
  0xd0   : > { %1493 = vmatprep.subr.mxu1 %v573_v39  ;;  %1282 = vmatprep.subr.mxu0 %v535_v3  ;;  %v705_v39 = vld [vmem:[#allocation3 + $0xfb8] sm:$0xff] }
  0xd1   : > { %1494 = vmatpush1.msra.mxu1 %v572_v41  ;;  %1283 = vmatpush1.msra.mxu0 %v534_v5  ;;  %v673_v41 = vld [vmem:[#allocation3 + $0xeb8] sm:$0xff]  ;;  %v448_v5 = vld [vmem:[#allocation3 + $0x7b0] sm:$0xff] }
  0xd2   : > { %1495 = vmatprep.subr.mxu1 %v541_v42  ;;  %1284 = vmatprep.subr.mxu0 %v503_v7  ;;  %v672_v42 = vld [vmem:[#allocation3 + $0xeb0] sm:$0xff]  ;;  %v449_v3 = vld [vmem:[#allocation3 + $0x7b8] sm:$0xff]  ;;  %v698_v7 = vld [vmem:[#allocation3 + $0xf80] sm:$0xff] }
  0xd3   : > { %1496 = vmatpush1.msra.mxu1 %v540_v44  ;;  %1285 = vmatpush1.msra.mxu0 %v502_v9  ;;  %v641_v44 = vld [vmem:[#allocation3 + $0xdb8] sm:$0xff]  ;;  %v667_v9 = vld [vmem:[#allocation3 + $0xe88] sm:$0xff] }
  0xd4   : > { %1497 = vmatprep.subr.mxu1 %v509_v45  ;;  %1286 = vmatprep.subr.mxu0 %v471_v11  ;;  %v246_v45 = vld [vmem:[#allocation3 + $0x160] sm:$0xff] }
  0xd5   : > { %1498 = vmatpush1.msra.mxu1 %v508_v47  ;;  %1287 = vmatpush1.msra.mxu0 %v470_v13  ;;  %v215_v47 = vld [vmem:[#allocation3 + $0x68] sm:$0xff]  ;;  %v666_v11 = vld [vmem:[#allocation3 + $0xe80] sm:$0xff] }
  0xd6   : > { %1499 = vmatprep.subr.mxu1 %v477_v48  ;;  %1288 = vmatprep.subr.mxu0 %v439_v15  ;;  %v609_v48 = vld [vmem:[#allocation3 + $0xcb8] sm:$0xff]  ;;  %v635_v13 = vld [vmem:[#allocation3 + $0xd88] sm:$0xff]  ;;  %v634_v15 = vld [vmem:[#allocation3 + $0xd80] sm:$0xff] }
  0xd7   : > { %1500 = vmatpush1.msra.mxu1 %v476_v50  ;;  %1289 = vmatpush1.msra.mxu0 %v438_v19  ;;  %v608_v50 = vld [vmem:[#allocation3 + $0xcb0] sm:$0xff]  ;;  %v603_v19 = vld [vmem:[#allocation3 + $0xc88] sm:$0xff] }
  0xd8   : > { %1501 = vmatprep.subr.mxu1 %v445_v52  ;;  %1290 = vmatprep.subr.mxu0 %v407_v21  ;;  %v577_v52 = vld [vmem:[#allocation3 + $0xbb8] sm:$0xff]  ;;  %v602_v21 = vld [vmem:[#allocation3 + $0xc80] sm:$0xff] }
  0xd9   : > { %1502 = vmatpush1.msra.mxu1 %v444_v54  ;;  %1291 = vmatpush1.msra.mxu0 %v406_v23  ;;  %v576_v54 = vld [vmem:[#allocation3 + $0xbb0] sm:$0xff]  ;;  %v571_v23 = vld [vmem:[#allocation3 + $0xb88] sm:$0xff] }
  0xda   : > { %1503 = vmatprep.subr.mxu1 %v413_v56  ;;  %1292 = vmatprep.subr.mxu0 %v375_v25  ;;  %v545_v56 = vld [vmem:[#allocation3 + $0xab8] sm:$0xff]  ;;  %v570_v25 = vld [vmem:[#allocation3 + $0xb80] sm:$0xff] }
  0xdb   : > { %1504 = vmatpush1.msra.mxu1 %v412_v58  ;;  %1293 = vmatpush1.msra.mxu0 %v374_v27  ;;  %v544_v58 = vld [vmem:[#allocation3 + $0xab0] sm:$0xff]  ;;  %v539_v27 = vld [vmem:[#allocation3 + $0xa88] sm:$0xff] }
  0xdc   : > { %1505 = vmatprep.subr.mxu1 %v381_v60  ;;  %1294 = vmatprep.subr.mxu0 %v343_v30  ;;  %v513_v60 = vld [vmem:[#allocation3 + $0x9b8] sm:$0xff]  ;;  %v538_v30 = vld [vmem:[#allocation3 + $0xa80] sm:$0xff] }
  0xdd   : > { %1506 = vmatpush1.msra.mxu1 %v380_v62  ;;  %1295 = vmatpush1.msra.mxu0 %v342_v33  ;;  %v512_v62 = vld [vmem:[#allocation3 + $0x9b0] sm:$0xff]  ;;  %v507_v33 = vld [vmem:[#allocation3 + $0x988] sm:$0xff] }
  0xde   : > { %1507 = vmatprep.subr.mxu1 %v349_v0  ;;  %1296 = vmatprep.subr.mxu0 %v311_v35  ;;  %v481_v0 = vld [vmem:[#allocation3 + $0x8b8] sm:$0xff]  ;;  %v506_v35 = vld [vmem:[#allocation3 + $0x980] sm:$0xff] }
  0xdf   : > { %1508 = vmatpush1.msra.mxu1 %v348_v2  ;;  %1297 = vmatpush1.msra.mxu0 %v310_v37  ;;  %v480_v2 = vld [vmem:[#allocation3 + $0x8b0] sm:$0xff]  ;;  %v475_v37 = vld [vmem:[#allocation3 + $0x888] sm:$0xff] }
  0xe0   : > { %1509 = vmatprep.subr.mxu1 %v317_v4  ;;  %1298 = vmatprep.subr.mxu0 %v279_v38  ;;  %v699_v4 = vld [vmem:[#allocation3 + $0xf88] sm:$0xff]  ;;  %v474_v38 = vld [vmem:[#allocation3 + $0x880] sm:$0xff] }
  0xe1   : > { %1510 = vmatpush1.msra.mxu1 %v316_v6  ;;  %1299 = vmatpush1.msra.mxu0 %v278_v18  ;;  %v417_v6 = vld [vmem:[#allocation3 + $0x6b8] sm:$0xff]  ;;  %v442_v18 = vld [vmem:[#allocation3 + $0x780] sm:$0xff] }
  0xe2   : > { %1511 = vmatprep.subr.mxu1 %v285_v8  ;;  %1300 = vmatprep.subr.mxu0 %v247_v43  ;;  %v416_v8 = vld [vmem:[#allocation3 + $0x6b0] sm:$0xff] }
  0xe3   : > { %1512 = vmatpush1.msra.mxu1 %v284_v10  ;;  %1301 = vmatpush1.msra.mxu0 %v246_v45  ;;  %v385_v10 = vld [vmem:[#allocation3 + $0x5b8] sm:$0xff]  ;;  %v800_v43 = vld [vmem:[#allocation3 + $0x12b0] sm:$0xff] }
  0xe4   : > { %1513 = vmatprep.subr.mxu1 %v253_v12  ;;  %1302 = vmatprep.subr.mxu0 %v215_v47  ;;  %v384_v12 = vld [vmem:[#allocation3 + $0x5b0] sm:$0xff]  ;;  %v769_v45 = vld [vmem:[#allocation3 + $0x11b8] sm:$0xff] }
  0xe5   : > { %1514 = vmatpush1.msra.mxu1 %v252_v14  ;;  %1303 = vmatpush1.msra.mxu0 %v214_v49  ;;  %v353_v14 = vld [vmem:[#allocation3 + $0x4b8] sm:$0xff]  ;;  %v379_v49 = vld [vmem:[#allocation3 + $0x588] sm:$0xff] }
  0xe6   : > { %1515 = vmatprep.subr.mxu1 %v221_v16  ;;  %1328 = vmatprep.subr.mxu0 %v823_v51  ;;  %v352_v16 = vld [vmem:[#allocation3 + $0x4b0] sm:$0xff]  ;;  %v378_v51 = vld [vmem:[#allocation3 + $0x580] sm:$0xff] }
  0xe7   : > { %1516 = vmatpush1.msra.mxu1 %v220_v20  ;;  %1329 = vmatpush2.msra.mxu0 %v822_v53  ;;  %v321_v20 = vld [vmem:[#allocation3 + $0x3b8] sm:$0xff]  ;;  %v347_v53 = vld [vmem:[#allocation3 + $0x488] sm:$0xff] }
  0xe8   : > { %1541 = vmatprep.subr.mxu1 %v829_v22  ;;  %1330 = vmatprep.subr.mxu0 %v791_v55  ;;  %v320_v22 = vld [vmem:[#allocation3 + $0x3b0] sm:$0xff] }
  0xe9   : > { %1542 = vmatpush2.msra.mxu1 %v828_v24  ;;  %1331 = vmatpush2.msra.mxu0 %v790_v57  ;;  %v289_v24 = vld [vmem:[#allocation3 + $0x2b8] sm:$0xff]  ;;  %v708_v55 = vld [vmem:[#allocation3 + $0xfd0] sm:$0xff]  ;;  %v346_v57 = vld [vmem:[#allocation3 + $0x480] sm:$0xff] }
  0xea   : > { %1543 = vmatprep.subr.mxu1 %v797_v26  ;;  %1332 = vmatprep.subr.mxu0 %v759_v59  ;;  %v288_v26 = vld [vmem:[#allocation3 + $0x2b0] sm:$0xff]  ;;  %v315_v59 = vld [vmem:[#allocation3 + $0x388] sm:$0xff] }
  0xeb   : > { %1544 = vmatpush2.msra.mxu1 %v796_v29  ;;  %1333 = vmatpush2.msra.mxu0 %v758_v61  ;;  %v257_v29 = vld [vmem:[#allocation3 + $0x1b8] sm:$0xff]  ;;  %v314_v61 = vld [vmem:[#allocation3 + $0x380] sm:$0xff] }
  0xec   : > { %1545 = vmatprep.subr.mxu1 %v765_v31  ;;  %1334 = vmatprep.subr.mxu0 %v727_v63  ;;  %v256_v31 = vld [vmem:[#allocation3 + $0x1b0] sm:$0xff]  ;;  %v283_v63 = vld [vmem:[#allocation3 + $0x288] sm:$0xff] }
  0xed   : > { %1546 = vmatpush2.msra.mxu1 %v764_v34  ;;  %1335 = vmatpush2.msra.mxu0 %v726_v1  ;;  %v225_v34 = vld [vmem:[#allocation3 + $0xb8] sm:$0xff]  ;;  %v282_v1 = vld [vmem:[#allocation3 + $0x280] sm:$0xff] }
  0xee   : > { %1547 = vmatprep.subr.mxu1 %v733_v36  ;;  %2139 = vmatprep.mubr.msk.f32.mxu0 %vm842_vm1, %v2350_v32  ;;  %v224_v36 = vld [vmem:[#allocation3 + $0xb0] sm:$0xff] }
  0xef   : > { %1548 = vmatpush2.msra.mxu1 %v732_v17  ;;  %1414 = vmatprep.subr.mxu0 %v699_v4  ;;  %v833_v17 = vld [vmem:[#allocation3 + $0x13b8] sm:$0xff] }
  0xf0   : > { %1550 = vmatmul.mubr.f32.vlgmr.msra.gmra.mxu1 %v2347_v28  ;;  %1627 = vmatprep.subr.mxu1 %v705_v39  ;;  %v832_v39 = vld [vmem:[#allocation3 + $0x13b0] sm:$0xff]  ;;  %v581_v4 = vld [vmem:[#allocation3 + $0xbd8] sm:$0xff] }
  0xf1   : > { %1628 = vmatpush1.msra.mxu1 %v704_v40  ;;  %2144 = vmatprep.mubr.msk.f32.mxu1 %vm842_vm1, %v2350_v32  ;;  %v443_v40 = vld [vmem:[#allocation3 + $0x788] sm:$0xff] }
  0xf2   : > { %1629 = vmatprep.subr.mxu1 %v673_v41  ;;  %1337 = vmatmul.mubr.f32.vlgmr.msra.gmra.mxu0 %v2347_v28  ;;  %v801_v41 = vld [vmem:[#allocation3 + $0x12b8] sm:$0xff] }
  0xf3   : > { %1630 = vmatpush1.msra.mxu1 %v672_v42  ;;  %1415 = vmatpush1.msra.mxu0 %v698_v7  ;;  %v219_v7 = vld [vmem:[#allocation3 + $0x88] sm:$0xff] }
  0xf4   : > { %1631 = vmatprep.subr.mxu1 %v641_v44  ;;  %1416 = vmatprep.subr.mxu0 %v667_v9  ;;  %v411_v44 = vld [vmem:[#allocation3 + $0x688] sm:$0xff]  ;;  %v218_v9 = vld [vmem:[#allocation3 + $0x80] sm:$0xff] }
  0xf5   : > { %1632 = vmatpush1.msra.mxu1 %v640_v46  ;;  %1417 = vmatpush1.msra.mxu0 %v666_v11  ;;  %v410_v46 = vld [vmem:[#allocation3 + $0x680] sm:$0xff]  ;;  %v827_v11 = vld [vmem:[#allocation3 + $0x1388] sm:$0xff] }
  0xf6   : > { %1633 = vmatprep.subr.mxu1 %v609_v48  ;;  %1418 = vmatprep.subr.mxu0 %v635_v13  ;;  %v768_v48 = vld [vmem:[#allocation3 + $0x11b0] sm:$0xff]  ;;  %v826_v13 = vld [vmem:[#allocation3 + $0x1380] sm:$0xff] }
  0xf7   : > { %1634 = vmatpush1.msra.mxu1 %v608_v50  ;;  %1419 = vmatpush1.msra.mxu0 %v634_v15  ;;  %v737_v50 = vld [vmem:[#allocation3 + $0x10b8] sm:$0xff]  ;;  %v795_v15 = vld [vmem:[#allocation3 + $0x1288] sm:$0xff] }
  0xf8   : > { %1635 = vmatprep.subr.mxu1 %v577_v52  ;;  %1420 = vmatprep.subr.mxu0 %v603_v19  ;;  %v736_v52 = vld [vmem:[#allocation3 + $0x10b0] sm:$0xff]  ;;  %v794_v19 = vld [vmem:[#allocation3 + $0x1280] sm:$0xff] }
  0xf9   : > { %1636 = vmatpush1.msra.mxu1 %v576_v54  ;;  %1421 = vmatpush1.msra.mxu0 %v602_v21  ;;  %v709_v54 = vld [vmem:[#allocation3 + $0xfd8] sm:$0xff]  ;;  %v763_v21 = vld [vmem:[#allocation3 + $0x1188] sm:$0xff] }
  0xfa   : > { %1637 = vmatprep.subr.mxu1 %v545_v56  ;;  %1422 = vmatprep.subr.mxu0 %v571_v23  ;;  %v677_v56 = vld [vmem:[#allocation3 + $0xed8] sm:$0xff]  ;;  %v762_v23 = vld [vmem:[#allocation3 + $0x1180] sm:$0xff] }
  0xfb   : > { %1638 = vmatpush1.msra.mxu1 %v544_v58  ;;  %1423 = vmatpush1.msra.mxu0 %v570_v25  ;;  %v676_v58 = vld [vmem:[#allocation3 + $0xed0] sm:$0xff]  ;;  %v731_v25 = vld [vmem:[#allocation3 + $0x1088] sm:$0xff] }
  0xfc   : > { %1639 = vmatprep.subr.mxu1 %v513_v60  ;;  %1424 = vmatprep.subr.mxu0 %v539_v27  ;;  %v645_v60 = vld [vmem:[#allocation3 + $0xdd8] sm:$0xff]  ;;  %v730_v27 = vld [vmem:[#allocation3 + $0x1080] sm:$0xff] }
  0xfd   : > { %1640 = vmatpush1.msra.mxu1 %v512_v62  ;;  %1425 = vmatpush1.msra.mxu0 %v538_v30  ;;  %v644_v62 = vld [vmem:[#allocation3 + $0xdd0] sm:$0xff]  ;;  %v389_v30 = vld [vmem:[#allocation3 + $0x5d8] sm:$0xff] }
  0xfe   : > { %1641 = vmatprep.subr.mxu1 %v481_v0  ;;  %1426 = vmatprep.subr.mxu0 %v507_v33  ;;  %v613_v0 = vld [vmem:[#allocation3 + $0xcd8] sm:$0xff]  ;;  %v388_v33 = vld [vmem:[#allocation3 + $0x5d0] sm:$0xff] }
  0xff   : > { %1642 = vmatpush1.msra.mxu1 %v480_v2  ;;  %1427 = vmatpush1.msra.mxu0 %v506_v35  ;;  %v612_v2 = vld [vmem:[#allocation3 + $0xcd0] sm:$0xff]  ;;  %v702_v35 = vld [vmem:[#allocation3 + $0xfa0] sm:$0xff] }
 0x100   : > { %1643 = vmatprep.subr.mxu1 %v449_v3  ;;  %1428 = vmatprep.subr.mxu0 %v475_v37  ;;  %v251_v3 = vld [vmem:[#allocation3 + $0x188] sm:$0xff] }
 0x101   : > { %1644 = vmatpush1.msra.mxu1 %v448_v5  ;;  %1429 = vmatpush1.msra.mxu0 %v474_v38  ;;  %v250_v5 = vld [vmem:[#allocation3 + $0x180] sm:$0xff]  ;;  %v671_v37 = vld [vmem:[#allocation3 + $0xea8] sm:$0xff] }
 0x102   : > { %1645 = vmatprep.subr.mxu1 %v417_v6  ;;  %1430 = vmatprep.subr.mxu0 %v443_v40  ;;  %v580_v6 = vld [vmem:[#allocation3 + $0xbd0] sm:$0xff]  ;;  %v670_v38 = vld [vmem:[#allocation3 + $0xea0] sm:$0xff]  ;;  %v639_v40 = vld [vmem:[#allocation3 + $0xda8] sm:$0xff] }
 0x103   : > { %1646 = vmatpush1.msra.mxu1 %v416_v8  ;;  %1431 = vmatpush1.msra.mxu0 %v442_v18  ;;  %v549_v8 = vld [vmem:[#allocation3 + $0xad8] sm:$0xff]  ;;  %v638_v18 = vld [vmem:[#allocation3 + $0xda0] sm:$0xff] }
 0x104   : > { %1647 = vmatprep.subr.mxu1 %v385_v10  ;;  %1432 = vmatprep.subr.mxu0 %v411_v44  ;;  %v548_v10 = vld [vmem:[#allocation3 + $0xad0] sm:$0xff]  ;;  %v261_v44 = vld [vmem:[#allocation3 + $0x1d8] sm:$0xff] }
 0x105   : > { %1648 = vmatpush1.msra.mxu1 %v384_v12  ;;  %1433 = vmatpush1.msra.mxu0 %v410_v46  ;;  %v517_v12 = vld [vmem:[#allocation3 + $0x9d8] sm:$0xff]  ;;  %v260_v46 = vld [vmem:[#allocation3 + $0x1d0] sm:$0xff] }
 0x106   : > { %1649 = vmatprep.subr.mxu1 %v353_v14  ;;  %1434 = vmatprep.subr.mxu0 %v379_v49  ;;  %v516_v14 = vld [vmem:[#allocation3 + $0x9d0] sm:$0xff]  ;;  %v574_v49 = vld [vmem:[#allocation3 + $0xba0] sm:$0xff] }
 0x107   : > { %1650 = vmatpush1.msra.mxu1 %v352_v16  ;;  %1435 = vmatpush1.msra.mxu0 %v378_v51  ;;  %v485_v16 = vld [vmem:[#allocation3 + $0x8d8] sm:$0xff]  ;;  %v543_v51 = vld [vmem:[#allocation3 + $0xaa8] sm:$0xff] }
 0x108   : > { %1651 = vmatprep.subr.mxu1 %v321_v20  ;;  %1436 = vmatprep.subr.mxu0 %v347_v53  ;;  %v484_v20 = vld [vmem:[#allocation3 + $0x8d0] sm:$0xff]  ;;  %v542_v53 = vld [vmem:[#allocation3 + $0xaa0] sm:$0xff] }
 0x109   : > { %1652 = vmatpush1.msra.mxu1 %v320_v22  ;;  %1437 = vmatpush1.msra.mxu0 %v346_v57  ;;  %v453_v22 = vld [vmem:[#allocation3 + $0x7d8] sm:$0xff]  ;;  %v510_v57 = vld [vmem:[#allocation3 + $0x9a0] sm:$0xff] }
 0x10a   : > { %1653 = vmatprep.subr.mxu1 %v289_v24  ;;  %1438 = vmatprep.subr.mxu0 %v315_v59  ;;  %v452_v24 = vld [vmem:[#allocation3 + $0x7d0] sm:$0xff] }
 0x10b   : > { %1654 = vmatpush1.msra.mxu1 %v288_v26  ;;  %1439 = vmatpush1.msra.mxu0 %v314_v61  ;;  %v421_v26 = vld [vmem:[#allocation3 + $0x6d8] sm:$0xff]  ;;  %v804_v59 = vld [vmem:[#allocation3 + $0x12d0] sm:$0xff] }
 0x10c   : > { %1655 = vmatprep.subr.mxu1 %v257_v29  ;;  %1440 = vmatprep.subr.mxu0 %v283_v63  ;;  %v420_v29 = vld [vmem:[#allocation3 + $0x6d0] sm:$0xff]  ;;  %v773_v61 = vld [vmem:[#allocation3 + $0x11d8] sm:$0xff] }
 0x10d   : > { %1656 = vmatpush1.msra.mxu1 %v256_v31  ;;  %1441 = vmatpush1.msra.mxu0 %v282_v1  ;;  %v703_v31 = vld [vmem:[#allocation3 + $0xfa8] sm:$0xff] }
 0x10e   : > { %1657 = vmatprep.subr.mxu1 %v225_v34  ;;  %1442 = vmatprep.subr.mxu0 %v251_v3  ;;  %v357_v34 = vld [vmem:[#allocation3 + $0x4d8] sm:$0xff]  ;;  %v447_v1 = vld [vmem:[#allocation3 + $0x7a8] sm:$0xff]  ;;  %v446_v3 = vld [vmem:[#allocation3 + $0x7a0] sm:$0xff] }
 0x10f   : > { %1658 = vmatpush1.msra.mxu1 %v224_v36  ;;  %1443 = vmatpush1.msra.mxu0 %v250_v5  ;;  %v356_v36 = vld [vmem:[#allocation3 + $0x4d0] sm:$0xff]  ;;  %v415_v5 = vld [vmem:[#allocation3 + $0x6a8] sm:$0xff] }
 0x110   : > { %v983_v42 = vpop.f32.mrf.mxu1  ;;  %1683 = vmatprep.subr.mxu1 %v833_v17  ;;  %1444 = vmatprep.subr.mxu0 %v219_v7  ;;  %v325_v17 = vld [vmem:[#allocation3 + $0x3d8] sm:$0xff] }
 0x111   : > { %1984 = vst [vmem:[%s2321_s3 + $0x10] sm:$0xff] %v983_v42  ;;  %1684 = vmatpush2.msra.mxu1 %v832_v39  ;;  %1445 = vmatpush1.msra.mxu0 %v218_v9  ;;  %v324_v39 = vld [vmem:[#allocation3 + $0x3d0] sm:$0xff]  ;;  %v681_v9 = vld [vmem:[#allocation3 + $0xef8] sm:$0xff] }
 0x112   : > { %v985_v47 = vpop.f32.mrf.mxu1  ;;  %1685 = vmatprep.subr.mxu1 %v801_v41  ;;  %1470 = vmatprep.subr.mxu0 %v827_v11  ;;  %v293_v41 = vld [vmem:[#allocation3 + $0x2d8] sm:$0xff]  ;;  %v292_v42 = vld [vmem:[#allocation3 + $0x2d0] sm:$0xff] }
 0x113   : > { %1985 = vst [vmem:[%s2321_s3 + $0x18] sm:$0xff] %v985_v47  ;;  %1686 = vmatpush2.msra.mxu1 %v800_v43  ;;  %1471 = vmatpush2.msra.mxu0 %v826_v13  ;;  %v607_v43 = vld [vmem:[#allocation3 + $0xca8] sm:$0xff] }
 0x114   : > { %1687 = vmatprep.subr.mxu1 %v769_v45  ;;  %1472 = vmatprep.subr.mxu0 %v795_v15  ;;  %v606_v45 = vld [vmem:[#allocation3 + $0xca0] sm:$0xff]  ;;  %v575_v47 = vld [vmem:[#allocation3 + $0xba8] sm:$0xff] }
 0x115   : > { %1688 = vmatpush2.msra.mxu1 %v768_v48  ;;  %1473 = vmatpush2.msra.mxu0 %v794_v19  ;;  %v229_v48 = vld [vmem:[#allocation3 + $0xd8] sm:$0xff]  ;;  %v383_v13 = vld [vmem:[#allocation3 + $0x5a8] sm:$0xff]  ;;  %v382_v15 = vld [vmem:[#allocation3 + $0x5a0] sm:$0xff] }
 0x116   : > { %1689 = vmatprep.subr.mxu1 %v737_v50  ;;  %1474 = vmatprep.subr.mxu0 %v763_v21  ;;  %v228_v50 = vld [vmem:[#allocation3 + $0xd0] sm:$0xff]  ;;  %v351_v19 = vld [vmem:[#allocation3 + $0x4a8] sm:$0xff]  ;;  %v350_v21 = vld [vmem:[#allocation3 + $0x4a0] sm:$0xff] }
 0x117   : > { %1690 = vmatpush2.msra.mxu1 %v736_v52  ;;  %1475 = vmatpush2.msra.mxu0 %v762_v23  ;;  %v837_v52 = vld [vmem:[#allocation3 + $0x13d8] sm:$0xff] }
 0x118   : > { %1692 = vmatmul.mubr.f32.vlgmr.msra.gmra.mxu1 %v2347_v28  ;;  %1769 = vmatprep.subr.mxu1 %v709_v54  ;;  %v836_v54 = vld [vmem:[#allocation3 + $0x13d0] sm:$0xff]  ;;  %v585_v23 = vld [vmem:[#allocation3 + $0xbf8] sm:$0xff] }
 0x119   : > { %1770 = vmatpush1.msra.mxu1 %v708_v55  ;;  %2146 = vmatprep.mubr.msk.f32.mxu1 %vm842_vm1, %v2350_v32  ;;  %v511_v55 = vld [vmem:[#allocation3 + $0x9a8] sm:$0xff] }
 0x11a   : > { %1771 = vmatprep.subr.mxu1 %v677_v56  ;;  %1476 = vmatprep.subr.mxu0 %v731_v25  ;;  %v805_v56 = vld [vmem:[#allocation3 + $0x12d8] sm:$0xff]  ;;  %v584_v25 = vld [vmem:[#allocation3 + $0xbf0] sm:$0xff] }
 0x11b   : > { %1772 = vmatpush1.msra.mxu1 %v676_v58  ;;  %1477 = vmatpush2.msra.mxu0 %v730_v27  ;;  %v286_v27 = vld [vmem:[#allocation3 + $0x2a0] sm:$0xff] }
 0x11c   : > { %1773 = vmatprep.subr.mxu1 %v645_v60  ;;  %2141 = vmatprep.mubr.msk.f32.mxu0 %vm842_vm1, %v2350_v32  ;;  %v479_v60 = vld [vmem:[#allocation3 + $0x8a8] sm:$0xff] }
 0x11d   : > { %1774 = vmatpush1.msra.mxu1 %v644_v62  ;;  %1556 = vmatprep.subr.mxu0 %v703_v31  ;;  %v478_v62 = vld [vmem:[#allocation3 + $0x8a0] sm:$0xff]  ;;  %v521_v31 = vld [vmem:[#allocation3 + $0x9f8] sm:$0xff] }
 0x11e   : > { %1775 = vmatprep.subr.mxu1 %v613_v0  ;;  %1479 = vmatmul.mubr.f32.vlgmr.msra.gmra.mxu0 %v2347_v28  ;;  %v772_v0 = vld [vmem:[#allocation3 + $0x11d0] sm:$0xff]  ;;  %v912_v7 = vpop.f32.mrf.mxu0 }
 0x11f   : > { %1776 = vmatpush1.msra.mxu1 %v612_v2  ;;  %1557 = vmatpush1.msra.mxu0 %v702_v35  ;;  %v741_v2 = vld [vmem:[#allocation3 + $0x10d8] sm:$0xff]  ;;  %1982 = vst [vmem:[%s2321_s3] sm:$0xff] %v912_v7  ;;  %v223_v35 = vld [vmem:[#allocation3 + $0xa8] sm:$0xff]  ;;  %v610_v7 = vld [vmem:[#allocation3 + $0xcc0] sm:$0xff] }
 0x120   : > { %1777 = vmatprep.subr.mxu1 %v581_v4  ;;  %1558 = vmatprep.subr.mxu0 %v671_v37  ;;  %v740_v4 = vld [vmem:[#allocation3 + $0x10d0] sm:$0xff]  ;;  %v914_v11 = vpop.f32.mrf.mxu0  ;;  %v222_v37 = vld [vmem:[#allocation3 + $0xa0] sm:$0xff] }
 0x121   : > { %1778 = vmatpush1.msra.mxu1 %v580_v6  ;;  %1559 = vmatpush1.msra.mxu0 %v670_v38  ;;  %v713_v6 = vld [vmem:[#allocation3 + $0xff8] sm:$0xff]  ;;  %1983 = vst [vmem:[%s2321_s3 + $0x8] sm:$0xff] %v914_v11  ;;  %v831_v38 = vld [vmem:[#allocation3 + $0x13a8] sm:$0xff]  ;;  %v578_v11 = vld [vmem:[#allocation3 + $0xbc0] sm:$0xff] }
 0x122   : > { %1779 = vmatprep.subr.mxu1 %v549_v8  ;;  %1560 = vmatprep.subr.mxu0 %v639_v40  ;;  %v712_v8 = vld [vmem:[#allocation3 + $0xff0] sm:$0xff]  ;;  %v830_v40 = vld [vmem:[#allocation3 + $0x13a0] sm:$0xff] }
 0x123   : > { %1780 = vmatpush1.msra.mxu1 %v548_v10  ;;  %1561 = vmatpush1.msra.mxu0 %v638_v18  ;;  %v414_v10 = vld [vmem:[#allocation3 + $0x6a0] sm:$0xff]  ;;  %v799_v18 = vld [vmem:[#allocation3 + $0x12a8] sm:$0xff] }
 0x124   : > { %1781 = vmatprep.subr.mxu1 %v517_v12  ;;  %1562 = vmatprep.subr.mxu0 %v607_v43  ;;  %v680_v12 = vld [vmem:[#allocation3 + $0xef0] sm:$0xff]  ;;  %v798_v43 = vld [vmem:[#allocation3 + $0x12a0] sm:$0xff] }
 0x125   : > { %1782 = vmatpush1.msra.mxu1 %v516_v14  ;;  %1563 = vmatpush1.msra.mxu0 %v606_v45  ;;  %v649_v14 = vld [vmem:[#allocation3 + $0xdf8] sm:$0xff]  ;;  %v767_v45 = vld [vmem:[#allocation3 + $0x11a8] sm:$0xff] }
 0x126   : > { %1783 = vmatprep.subr.mxu1 %v485_v16  ;;  %1564 = vmatprep.subr.mxu0 %v575_v47  ;;  %v648_v16 = vld [vmem:[#allocation3 + $0xdf0] sm:$0xff]  ;;  %v766_v47 = vld [vmem:[#allocation3 + $0x11a0] sm:$0xff] }
 0x127   : > { %1784 = vmatpush1.msra.mxu1 %v484_v20  ;;  %1565 = vmatpush1.msra.mxu0 %v574_v49  ;;  %v617_v20 = vld [vmem:[#allocation3 + $0xcf8] sm:$0xff]  ;;  %v735_v49 = vld [vmem:[#allocation3 + $0x10a8] sm:$0xff] }
 0x128   : > { %1785 = vmatprep.subr.mxu1 %v453_v22  ;;  %1566 = vmatprep.subr.mxu0 %v543_v51  ;;  %v319_v22 = vld [vmem:[#allocation3 + $0x3a8] sm:$0xff]  ;;  %v734_v51 = vld [vmem:[#allocation3 + $0x10a0] sm:$0xff] }
 0x129   : > { %1786 = vmatpush1.msra.mxu1 %v452_v24  ;;  %1567 = vmatpush1.msra.mxu0 %v542_v53  ;;  %v318_v24 = vld [vmem:[#allocation3 + $0x3a0] sm:$0xff]  ;;  %v329_v53 = vld [vmem:[#allocation3 + $0x3f8] sm:$0xff] }
 0x12a   : > { %1787 = vmatprep.subr.mxu1 %v421_v26  ;;  %1568 = vmatprep.subr.mxu0 %v511_v55  ;;  %v553_v26 = vld [vmem:[#allocation3 + $0xaf8] sm:$0xff]  ;;  %v328_v55 = vld [vmem:[#allocation3 + $0x3f0] sm:$0xff] }
 0x12b   : > { %1788 = vmatpush1.msra.mxu1 %v420_v29  ;;  %1569 = vmatpush1.msra.mxu0 %v510_v57  ;;  %v552_v29 = vld [vmem:[#allocation3 + $0xaf0] sm:$0xff]  ;;  %v2378_v57 = vld [vmem:[#allocation2 + $0x8] sm:$0xff] }
 0x12c   : > { %1789 = vmatprep.subr.mxu1 %v389_v30  ;;  %1570 = vmatprep.subr.mxu0 %v479_v60  ;;  %v255_v30 = vld [vmem:[#allocation3 + $0x1a8] sm:$0xff] }
 0x12d   : > { %1790 = vmatpush1.msra.mxu1 %v388_v33  ;;  %1571 = vmatpush1.msra.mxu0 %v478_v62  ;;  %v254_v33 = vld [vmem:[#allocation3 + $0x1a0] sm:$0xff]  ;;  %v675_v60 = vld [vmem:[#allocation3 + $0xec8] sm:$0xff]  ;;  %v2382_v62 = vld [vmem:[#allocation2] sm:$0xff] }
 0x12e   : > { %1791 = vmatprep.subr.mxu1 %v357_v34  ;;  %1572 = vmatprep.subr.mxu0 %v447_v1  ;;  %v520_v34 = vld [vmem:[#allocation3 + $0x9f0] sm:$0xff]  ;;  %v643_v1 = vld [vmem:[#allocation3 + $0xdc8] sm:$0xff] }
 0x12f   : > { %1792 = vmatpush1.msra.mxu1 %v356_v36  ;;  %1573 = vmatpush1.msra.mxu0 %v446_v3  ;;  %v489_v36 = vld [vmem:[#allocation3 + $0x8f8] sm:$0xff]  ;;  %v642_v3 = vld [vmem:[#allocation3 + $0xdc0] sm:$0xff] }
 0x130   : > { %1793 = vmatprep.subr.mxu1 %v325_v17  ;;  %1574 = vmatprep.subr.mxu0 %v415_v5  ;;  %v488_v17 = vld [vmem:[#allocation3 + $0x8f0] sm:$0xff]  ;;  %v611_v5 = vld [vmem:[#allocation3 + $0xcc8] sm:$0xff] }
 0x131   : > { %1794 = vmatpush1.msra.mxu1 %v324_v39  ;;  %1575 = vmatpush1.msra.mxu0 %v414_v10  ;;  %v457_v39 = vld [vmem:[#allocation3 + $0x7f8] sm:$0xff] }
 0x132   : > { %1795 = vmatprep.subr.mxu1 %v293_v41  ;;  %1576 = vmatprep.subr.mxu0 %v383_v13  ;;  %v456_v41 = vld [vmem:[#allocation3 + $0x7f0] sm:$0xff]  ;;  %v809_v10 = vld [vmem:[#allocation3 + $0x12f8] sm:$0xff] }
 0x133   : > { %1796 = vmatpush1.msra.mxu1 %v292_v42  ;;  %1577 = vmatpush1.msra.mxu0 %v382_v15  ;;  %v425_v42 = vld [vmem:[#allocation3 + $0x6f8] sm:$0xff]  ;;  %v808_v13 = vld [vmem:[#allocation3 + $0x12f0] sm:$0xff] }
 0x134   : > { %1797 = vmatprep.subr.mxu1 %v261_v44  ;;  %1578 = vmatprep.subr.mxu0 %v351_v19  ;;  %v424_v44 = vld [vmem:[#allocation3 + $0x6f0] sm:$0xff]  ;;  %v777_v15 = vld [vmem:[#allocation3 + $0x11f8] sm:$0xff] }
 0x135   : > { %1798 = vmatpush1.msra.mxu1 %v260_v46  ;;  %1579 = vmatpush1.msra.mxu0 %v350_v21  ;;  %v393_v46 = vld [vmem:[#allocation3 + $0x5f8] sm:$0xff]  ;;  %v515_v21 = vld [vmem:[#allocation3 + $0x9c8] sm:$0xff] }
 0x136   : > { %1799 = vmatprep.subr.mxu1 %v229_v48  ;;  %1580 = vmatprep.subr.mxu0 %v319_v22  ;;  %v392_v48 = vld [vmem:[#allocation3 + $0x5f0] sm:$0xff]  ;;  %v514_v22 = vld [vmem:[#allocation3 + $0x9c0] sm:$0xff] }
 0x137   : > { %1800 = vmatpush1.msra.mxu1 %v228_v50  ;;  %1581 = vmatpush1.msra.mxu0 %v318_v24  ;;  %v361_v50 = vld [vmem:[#allocation3 + $0x4f8] sm:$0xff]  ;;  %v483_v24 = vld [vmem:[#allocation3 + $0x8c8] sm:$0xff] }
 0x138   : > { %v1125_v58 = vpop.f32.mrf.mxu1  ;;  %1825 = vmatprep.subr.mxu1 %v837_v52  ;;  %v360_v52 = vld [vmem:[#allocation3 + $0x4f0] sm:$0xff]  ;;  %2143 = vmatprep.mubr.msk.f32.mxu0 %vm842_vm1, %v2378_v57 }
 0x139   : > { %1988 = vst [vmem:[%s2321_s3 + $0x30] sm:$0xff] %v1125_v58  ;;  %1826 = vmatpush2.msra.mxu1 %v836_v54  ;;  %v707_v54 = vld [vmem:[#allocation3 + $0xfc8] sm:$0xff]  ;;  %v706_v58 = vld [vmem:[#allocation3 + $0xfc0] sm:$0xff] }
 0x13a   : > { %v1127_v63 = vpop.f32.mrf.mxu1  ;;  %1827 = vmatprep.subr.mxu1 %v805_v56  ;;  %v297_v56 = vld [vmem:[#allocation3 + $0x2f8] sm:$0xff] }
 0x13b   : > { %1989 = vst [vmem:[%s2321_s3 + $0x38] sm:$0xff] %v1127_v63  ;;  %1828 = vmatpush2.msra.mxu1 %v804_v59  ;;  %v296_v59 = vld [vmem:[#allocation3 + $0x2f0] sm:$0xff]  ;;  %v674_v63 = vld [vmem:[#allocation3 + $0xec0] sm:$0xff] }
 0x13c   : > { %1829 = vmatprep.subr.mxu1 %v773_v61  ;;  %v265_v61 = vld [vmem:[#allocation3 + $0x1f8] sm:$0xff] }
 0x13d   : > { %1830 = vmatpush2.msra.mxu1 %v772_v0  ;;  %v264_v0 = vld [vmem:[#allocation3 + $0x1f0] sm:$0xff] }
 0x13e   : > { %1831 = vmatprep.subr.mxu1 %v741_v2  ;;  %v233_v2 = vld [vmem:[#allocation3 + $0xf8] sm:$0xff] }
 0x13f   : > { %1832 = vmatpush2.msra.mxu1 %v740_v4  ;;  %v232_v4 = vld [vmem:[#allocation3 + $0xf0] sm:$0xff] }
 0x140   : > { %1834 = vmatmul.mubr.f32.vlgmr.msra.gmra.mxu1 %v2347_v28  ;;  %1911 = vmatprep.subr.mxu1 %v713_v6  ;;  %v616_v28 = vld [vmem:[#allocation3 + $0xcf0] sm:$0xff]  ;;  %v841_v6 = vld [vmem:[#allocation3 + $0x13f8] sm:$0xff] }
 0x141   : > { %1912 = vmatpush1.msra.mxu1 %v712_v8  ;;  %2148 = vmatprep.mubr.msk.f32.mxu1 %vm842_vm1, %v2350_v32  ;;  %v287_v32 = vld [vmem:[#allocation3 + $0x2a8] sm:$0xff]  ;;  %v840_v8 = vld [vmem:[#allocation3 + $0x13f0] sm:$0xff] }
 0x142   : > { %1913 = vmatprep.subr.mxu1 %v681_v9  ;;  %1582 = vmatprep.subr.mxu0 %v287_v32  ;;  %v579_v9 = vld [vmem:[#allocation3 + $0xbc8] sm:$0xff] }
 0x143   : > { %1914 = vmatpush1.msra.mxu1 %v680_v12  ;;  %1583 = vmatpush1.msra.mxu0 %v286_v27  ;;  %v451_v32 = vld [vmem:[#allocation3 + $0x7c8] sm:$0xff] }
 0x144   : > { %1915 = vmatprep.subr.mxu1 %v649_v14  ;;  %1584 = vmatprep.subr.mxu0 %v255_v30  ;;  %v547_v14 = vld [vmem:[#allocation3 + $0xac8] sm:$0xff] }
 0x145   : > { %1916 = vmatpush1.msra.mxu1 %v648_v16  ;;  %1585 = vmatpush1.msra.mxu0 %v254_v33  ;;  %v546_v16 = vld [vmem:[#allocation3 + $0xac0] sm:$0xff]  ;;  %v419_v27 = vld [vmem:[#allocation3 + $0x6c8] sm:$0xff] }
 0x146   : > { %1917 = vmatprep.subr.mxu1 %v617_v20  ;;  %1586 = vmatprep.subr.mxu0 %v223_v35  ;;  %v776_v20 = vld [vmem:[#allocation3 + $0x11f0] sm:$0xff]  ;;  %v386_v33 = vld [vmem:[#allocation3 + $0x5c0] sm:$0xff]  ;;  %v355_v35 = vld [vmem:[#allocation3 + $0x4c8] sm:$0xff] }
 0x147   : > { %1918 = vmatpush1.msra.mxu1 %v616_v28  ;;  %1587 = vmatpush1.msra.mxu0 %v222_v37  ;;  %v745_v28 = vld [vmem:[#allocation3 + $0x10f8] sm:$0xff]  ;;  %v323_v37 = vld [vmem:[#allocation3 + $0x3c8] sm:$0xff] }
 0x148   : > { %1919 = vmatprep.subr.mxu1 %v585_v23  ;;  %1612 = vmatprep.subr.mxu0 %v831_v38  ;;  %v744_v23 = vld [vmem:[#allocation3 + $0x10f0] sm:$0xff]  ;;  %v291_v38 = vld [vmem:[#allocation3 + $0x2c8] sm:$0xff] }
 0x149   : > { %1920 = vmatpush1.msra.mxu1 %v584_v25  ;;  %1613 = vmatpush2.msra.mxu0 %v830_v40  ;;  %v482_v25 = vld [vmem:[#allocation3 + $0x8c0] sm:$0xff]  ;;  %v259_v40 = vld [vmem:[#allocation3 + $0x1c8] sm:$0xff] }
 0x14a   : > { %1921 = vmatprep.subr.mxu1 %v553_v26  ;;  %1614 = vmatprep.subr.mxu0 %v799_v18  ;;  %v450_v26 = vld [vmem:[#allocation3 + $0x7c0] sm:$0xff]  ;;  %v1054_v30 = vpop.f32.mrf.mxu0  ;;  %v227_v18 = vld [vmem:[#allocation3 + $0xc8] sm:$0xff] }
 0x14b   : > { %1922 = vmatpush1.msra.mxu1 %v552_v29  ;;  %1615 = vmatpush2.msra.mxu0 %v798_v43  ;;  %v418_v29 = vld [vmem:[#allocation3 + $0x6c0] sm:$0xff]  ;;  %1986 = vst [vmem:[%s2321_s3 + $0x20] sm:$0xff] %v1054_v30  ;;  %v835_v43 = vld [vmem:[#allocation3 + $0x13c8] sm:$0xff] }
 0x14c   : > { %1923 = vmatprep.subr.mxu1 %v521_v31  ;;  %1616 = vmatprep.subr.mxu0 %v767_v45  ;;  %v387_v31 = vld [vmem:[#allocation3 + $0x5c8] sm:$0xff]  ;;  %v774_v30 = vld [vmem:[#allocation3 + $0x11e0] sm:$0xff] }
 0x14d   : > { %1924 = vmatpush1.msra.mxu1 %v520_v34  ;;  %1617 = vmatpush2.msra.mxu0 %v766_v47  ;;  %v1056_v34 = vpop.f32.mrf.mxu0  ;;  %v803_v45 = vld [vmem:[#allocation3 + $0x12c8] sm:$0xff] }
 0x14e   : > { %1925 = vmatprep.subr.mxu1 %v489_v36  ;;  %1618 = vmatprep.subr.mxu0 %v735_v49  ;;  %1987 = vst [vmem:[%s2321_s3 + $0x28] sm:$0xff] %v1056_v34  ;;  %v354_v36 = vld [vmem:[#allocation3 + $0x4c0] sm:$0xff]  ;;  %v771_v47 = vld [vmem:[#allocation3 + $0x11c8] sm:$0xff] }
 0x14f   : > { %1926 = vmatpush1.msra.mxu1 %v488_v17  ;;  %1619 = vmatpush2.msra.mxu0 %v734_v51  ;;  %v322_v17 = vld [vmem:[#allocation3 + $0x3c0] sm:$0xff]  ;;  %v739_v49 = vld [vmem:[#allocation3 + $0x10c8] sm:$0xff] }
 0x150   : > { %1927 = vmatprep.subr.mxu1 %v457_v39  ;;  %1698 = vmatprep.subr.mxu0 %v707_v54  ;;  %v290_v39 = vld [vmem:[#allocation3 + $0x2c0] sm:$0xff]  ;;  %v711_v51 = vld [vmem:[#allocation3 + $0xfe8] sm:$0xff] }
 0x151   : > { %1928 = vmatpush1.msra.mxu1 %v456_v41  ;;  %1621 = vmatmul.mubr.f32.vlgmr.msra.gmra.mxu0 %v2382_v62  ;;  %v258_v41 = vld [vmem:[#allocation3 + $0x1c0] sm:$0xff] }
 0x152   : > { %1929 = vmatprep.subr.mxu1 %v425_v42  ;;  %1699 = vmatpush1.msra.mxu0 %v706_v58  ;;  %v226_v42 = vld [vmem:[#allocation3 + $0xc0] sm:$0xff]  ;;  %v615_v58 = vld [vmem:[#allocation3 + $0xce8] sm:$0xff] }
 0x153   : > { %1930 = vmatpush1.msra.mxu1 %v424_v44  ;;  %1700 = vmatprep.subr.mxu0 %v675_v60  ;;  %v834_v44 = vld [vmem:[#allocation3 + $0x13c0] sm:$0xff]  ;;  %v583_v60 = vld [vmem:[#allocation3 + $0xbe8] sm:$0xff] }
 0x154   : > { %1931 = vmatprep.subr.mxu1 %v393_v46  ;;  %1701 = vmatpush1.msra.mxu0 %v674_v63  ;;  %v802_v46 = vld [vmem:[#allocation3 + $0x12c0] sm:$0xff] }
 0x155   : > { %1932 = vmatpush1.msra.mxu1 %v392_v48  ;;  %1702 = vmatprep.subr.mxu0 %v643_v1  ;;  %v770_v48 = vld [vmem:[#allocation3 + $0x11c0] sm:$0xff] }
 0x156   : > { %1933 = vmatprep.subr.mxu1 %v361_v50  ;;  %1703 = vmatpush1.msra.mxu0 %v642_v3  ;;  %v738_v50 = vld [vmem:[#allocation3 + $0x10c0] sm:$0xff] }
 0x157   : > { %1934 = vmatpush1.msra.mxu1 %v360_v52  ;;  %1704 = vmatprep.subr.mxu0 %v611_v5  ;;  %v710_v52 = vld [vmem:[#allocation3 + $0xfe0] sm:$0xff] }
 0x158   : > { %1935 = vmatprep.subr.mxu1 %v329_v53  ;;  %1705 = vmatpush1.msra.mxu0 %v610_v7  ;;  %v679_v53 = vld [vmem:[#allocation3 + $0xee8] sm:$0xff]  ;;  %v678_v54 = vld [vmem:[#allocation3 + $0xee0] sm:$0xff] }
 0x159   : > { %1936 = vmatpush1.msra.mxu1 %v328_v55  ;;  %1706 = vmatprep.subr.mxu0 %v579_v9  ;;  %v647_v55 = vld [vmem:[#allocation3 + $0xde8] sm:$0xff]  ;;  %v550_v1 = vld [vmem:[#allocation3 + $0xae0] sm:$0xff] }
 0x15a   : > { %1937 = vmatprep.subr.mxu1 %v297_v56  ;;  %1707 = vmatpush1.msra.mxu0 %v578_v11  ;;  %v646_v56 = vld [vmem:[#allocation3 + $0xde0] sm:$0xff] }
 0x15b   : > { %1938 = vmatpush1.msra.mxu1 %v296_v59  ;;  %1708 = vmatprep.subr.mxu0 %v547_v14  ;;  %v614_v59 = vld [vmem:[#allocation3 + $0xce0] sm:$0xff] }
 0x15c   : > { %1939 = vmatprep.subr.mxu1 %v265_v61  ;;  %1709 = vmatpush1.msra.mxu0 %v546_v16  ;;  %v582_v61 = vld [vmem:[#allocation3 + $0xbe0] sm:$0xff] }
 0x15d   : > { %1940 = vmatpush1.msra.mxu1 %v264_v0  ;;  %1710 = vmatprep.subr.mxu0 %v515_v21  ;;  %v551_v0 = vld [vmem:[#allocation3 + $0xae8] sm:$0xff]  ;;  %v518_v3 = vld [vmem:[#allocation3 + $0x9e0] sm:$0xff] }
 0x15e   : > { %1941 = vmatprep.subr.mxu1 %v233_v2  ;;  %1711 = vmatpush1.msra.mxu0 %v514_v22  ;;  %v486_v5 = vld [vmem:[#allocation3 + $0x8e0] sm:$0xff] }
 0x15f   : > { %1942 = vmatpush1.msra.mxu1 %v232_v4  ;;  %1712 = vmatprep.subr.mxu0 %v483_v24  ;;  %v487_v4 = vld [vmem:[#allocation3 + $0x8e8] sm:$0xff]  ;;  %v454_v7 = vld [vmem:[#allocation3 + $0x7e0] sm:$0xff] }
 0x160   : > { %v1267_v12 = vpop.f32.mrf.mxu1  ;;  %1967 = vmatprep.subr.mxu1 %v841_v6  ;;  %1713 = vmatpush1.msra.mxu0 %v482_v25  ;;  %v455_v6 = vld [vmem:[#allocation3 + $0x7e8] sm:$0xff]  ;;  %v422_v9 = vld [vmem:[#allocation3 + $0x6e0] sm:$0xff] }
 0x161   : > { %1992 = vst [vmem:[%s2321_s3 + $0x50] sm:$0xff] %v1267_v12  ;;  %1968 = vmatpush2.msra.mxu1 %v840_v8  ;;  %1714 = vmatprep.subr.mxu0 %v451_v32  ;;  %v423_v8 = vld [vmem:[#allocation3 + $0x6e8] sm:$0xff]  ;;  %v390_v11 = vld [vmem:[#allocation3 + $0x5e0] sm:$0xff] }
 0x162   : > { %v1269_v19 = vpop.f32.mrf.mxu1  ;;  %1969 = vmatprep.subr.mxu1 %v809_v10  ;;  %2145 = vmatprep.mubr.msk.f32.mxu0 %vm842_vm1, %v2378_v57  ;;  %v391_v10 = vld [vmem:[#allocation3 + $0x5e8] sm:$0xff]  ;;  %v326_v16 = vld [vmem:[#allocation3 + $0x3e0] sm:$0xff] }
 0x163   : > { %1993 = vst [vmem:[%s2321_s3 + $0x58] sm:$0xff] %v1269_v19  ;;  %1970 = vmatpush2.msra.mxu1 %v808_v13  ;;  %1715 = vmatpush1.msra.mxu0 %v450_v26  ;;  %v359_v12 = vld [vmem:[#allocation3 + $0x4e8] sm:$0xff]  ;;  %v358_v13 = vld [vmem:[#allocation3 + $0x4e0] sm:$0xff] }
 0x164   : > { %1971 = vmatprep.subr.mxu1 %v777_v15  ;;  %1716 = vmatprep.subr.mxu0 %v419_v27  ;;  %v327_v15 = vld [vmem:[#allocation3 + $0x3e8] sm:$0xff]  ;;  %v294_v21 = vld [vmem:[#allocation3 + $0x2e0] sm:$0xff] }
 0x165   : > { %1972 = vmatpush2.msra.mxu1 %v776_v20  ;;  %1717 = vmatpush1.msra.mxu0 %v418_v29  ;;  %v295_v20 = vld [vmem:[#allocation3 + $0x2e8] sm:$0xff]  ;;  %v262_v22 = vld [vmem:[#allocation3 + $0x1e0] sm:$0xff] }
 0x166   : > { %1973 = vmatprep.subr.mxu1 %v745_v28  ;;  %1718 = vmatprep.subr.mxu0 %v387_v31  ;;  %v263_v28 = vld [vmem:[#allocation3 + $0x1e8] sm:$0xff]  ;;  %v230_v24 = vld [vmem:[#allocation3 + $0xe0] sm:$0xff] }
 0x167   : > { %1974 = vmatpush2.msra.mxu1 %v744_v23  ;;  %1719 = vmatpush1.msra.mxu0 %v386_v33  ;;  %v231_v23 = vld [vmem:[#allocation3 + $0xe8] sm:$0xff]  ;;  %v838_v32 = vld [vmem:[#allocation3 + $0x13e0] sm:$0xff] }
 0x168   : > { %1976 = vmatmul.mubr.f32.vlgmr.msra.gmra.mxu1 %v2382_v62  ;;  %1720 = vmatprep.subr.mxu0 %v355_v35  ;;  %v839_v25 = vld [vmem:[#allocation3 + $0x13e8] sm:$0xff]  ;;  %v806_v27 = vld [vmem:[#allocation3 + $0x12e0] sm:$0xff] }
 0x169   : > { %1721 = vmatpush1.msra.mxu0 %v354_v36  ;;  %v807_v26 = vld [vmem:[#allocation3 + $0x12e8] sm:$0xff]  ;;  %v742_v33 = vld [vmem:[#allocation3 + $0x10e0] sm:$0xff] }
 0x16a   : > { %1722 = vmatprep.subr.mxu0 %v323_v37  ;;  %v775_v29 = vld [vmem:[#allocation3 + $0x11e8] sm:$0xff] }
 0x16b   : > { %1723 = vmatpush1.msra.mxu0 %v322_v17  ;;  %v743_v31 = vld [vmem:[#allocation3 + $0x10e8] sm:$0xff] }
 0x16c   : > { %1724 = vmatprep.subr.mxu0 %v291_v38 }
 0x16d   : > { %1725 = vmatpush1.msra.mxu0 %v290_v39 }
 0x16e   : > { %1726 = vmatprep.subr.mxu0 %v259_v40 }
 0x16f   : > { %1727 = vmatpush1.msra.mxu0 %v258_v41 }
 0x170   : > { %1728 = vmatprep.subr.mxu0 %v227_v18 }
 0x171   : > { %1729 = vmatpush1.msra.mxu0 %v226_v42 }
 0x172   : > { %1754 = vmatprep.subr.mxu0 %v835_v43 }
 0x173   : > { %1755 = vmatpush2.msra.mxu0 %v834_v44 }
 0x174   : > { %1756 = vmatprep.subr.mxu0 %v803_v45 }
 0x175   : > { %1757 = vmatpush2.msra.mxu0 %v802_v46 }
 0x176   : > { %1758 = vmatprep.subr.mxu0 %v771_v47 }
 0x177   : > { %1759 = vmatpush2.msra.mxu0 %v770_v48 }
 0x178   : > { %1760 = vmatprep.subr.mxu0 %v739_v49 }
 0x179   : > { %1761 = vmatpush2.msra.mxu0 %v738_v50 }
 0x17a   : > { %1840 = vmatprep.subr.mxu0 %v711_v51  ;;  %1763 = vmatmul.mubr.f32.vlgmr.msra.gmra.mxu0 %v2382_v62 }
 0x17b   : > { %1841 = vmatpush1.msra.mxu0 %v710_v52  ;;  %2147 = vmatprep.mubr.msk.f32.mxu0 %vm842_vm1, %v2378_v57  ;;  %v519_v57 = vld [vmem:[#allocation3 + $0x9e8] sm:$0xff] }
 0x17c   : > { %1842 = vmatprep.subr.mxu0 %v679_v53 }
 0x17d   : > { %1843 = vmatpush1.msra.mxu0 %v678_v54 }
 0x17e   : > { %1844 = vmatprep.subr.mxu0 %v647_v55 }
 0x17f   : > { %1845 = vmatpush1.msra.mxu0 %v646_v56 }
 0x180   : > { %1846 = vmatprep.subr.mxu0 %v615_v58 }
 0x181   : > { %1847 = vmatpush1.msra.mxu0 %v614_v59 }
 0x182   : > { %1848 = vmatprep.subr.mxu0 %v583_v60 }
 0x183   : > { %1849 = vmatpush1.msra.mxu0 %v582_v61 }
 0x184   : > { %1850 = vmatprep.subr.mxu0 %v551_v0  ;;  %v1196_v14 = vpop.f32.mrf.mxu0 }
 0x185   : > { %1851 = vmatpush1.msra.mxu0 %v550_v1  ;;  %1990 = vst [vmem:[%s2321_s3 + $0x40] sm:$0xff] %v1196_v14 }
 0x186   : > { %1852 = vmatprep.subr.mxu0 %v519_v57  ;;  %v1198_v19 = vpop.f32.mrf.mxu0 }
 0x187   : > { %1853 = vmatpush1.msra.mxu0 %v518_v3  ;;  %1991 = vst [vmem:[%s2321_s3 + $0x48] sm:$0xff] %v1198_v19 }
 0x188   : > { %v1409_v63 = vpop.f32.mrf.mxu1  ;;  %1854 = vmatprep.subr.mxu0 %v487_v4 }
 0x189   : > { %1996 = vst [vmem:[%s2321_s3 + $0x70] sm:$0xff] %v1409_v63  ;;  %1855 = vmatpush1.msra.mxu0 %v486_v5 }
 0x18a   : > { %v1411_v2 = vpop.f32.mrf.mxu1  ;;  %1856 = vmatprep.subr.mxu0 %v455_v6 }
 0x18b   : > { %1997 = vst [vmem:[%s2321_s3 + $0x78] sm:$0xff] %v1411_v2  ;;  %1857 = vmatpush1.msra.mxu0 %v454_v7 }
 0x18c   : > { %1858 = vmatprep.subr.mxu0 %v423_v8 }
 0x18d   : > { %1859 = vmatpush1.msra.mxu0 %v422_v9 }
 0x18e   : > { %1860 = vmatprep.subr.mxu0 %v391_v10 }
 0x18f   : > { %1861 = vmatpush1.msra.mxu0 %v390_v11 }
 0x190   : > { %1862 = vmatprep.subr.mxu0 %v359_v12 }
 0x191   : > { %1863 = vmatpush1.msra.mxu0 %v358_v13 }
 0x192   : > { %1864 = vmatprep.subr.mxu0 %v327_v15 }
 0x193   : > { %1865 = vmatpush1.msra.mxu0 %v326_v16 }
 0x194   : > { %1866 = vmatprep.subr.mxu0 %v295_v20 }
 0x195   : > { %1867 = vmatpush1.msra.mxu0 %v294_v21 }
 0x196   : > { %1868 = vmatprep.subr.mxu0 %v263_v28 }
 0x197   : > { %1869 = vmatpush1.msra.mxu0 %v262_v22 }
 0x198   : > { %1870 = vmatprep.subr.mxu0 %v231_v23 }
 0x199   : > { %1871 = vmatpush1.msra.mxu0 %v230_v24 }
 0x19a   : > { %1896 = vmatprep.subr.mxu0 %v839_v25 }
 0x19b   : > { %1897 = vmatpush2.msra.mxu0 %v838_v32 }
 0x19c   : > { %1898 = vmatprep.subr.mxu0 %v807_v26 }
 0x19d   : > { %1899 = vmatpush2.msra.mxu0 %v806_v27 }
 0x19e   : > { %1900 = vmatprep.subr.mxu0 %v775_v29 }
 0x19f   : > { %1901 = vmatpush2.msra.mxu0 %v774_v30 }
 0x1a0   : > { %1902 = vmatprep.subr.mxu0 %v743_v31 }
 0x1a1   : > { %1903 = vmatpush2.msra.mxu0 %v742_v33 }
 0x1a2   : > { %1905 = vmatmul.mubr.f32.vlgmr.msra.gmra.mxu0 %v2382_v62 }
 0x1b0   : > { %v1551_v34 = vpop.f32.mrf.mxu1 }
 0x1b1   : > { %2000 = vst [vmem:[%s2321_s3 + $0x90] sm:$0xff] %v1551_v34 }
 0x1b2   : > { %v1553_v35 = vpop.f32.mrf.mxu1  ;;  %v1338_v36 = vpop.f32.mrf.mxu0 }
 0x1b3   : > { %2001 = vst [vmem:[%s2321_s3 + $0x98] sm:$0xff] %v1553_v35  ;;  %1994 = vst [vmem:[%s2321_s3 + $0x60] sm:$0xff] %v1338_v36 }
 0x1b4   : > { %v1340_v37 = vpop.f32.mrf.mxu0 }
 0x1b5   : > { %1995 = vst [vmem:[%s2321_s3 + $0x68] sm:$0xff] %v1340_v37 }
 0x1d8   : > { %v1693_v17 = vpop.f32.mrf.mxu1 }
 0x1d9   : > { %2004 = vst [vmem:[%s2321_s3 + $0xb0] sm:$0xff] %v1693_v17 }
 0x1da   : > { %v1695_v38 = vpop.f32.mrf.mxu1 }
 0x1db   : > { %2005 = vst [vmem:[%s2321_s3 + $0xb8] sm:$0xff] %v1695_v38 }
 0x1de   : > { %v1480_v62 = vpop.f32.mrf.mxu0 }
 0x1df   : > { %1998 = vst [vmem:[%s2321_s3 + $0x80] sm:$0xff] %v1480_v62 }
 0x1e0   : > { %v1482_v39 = vpop.f32.mrf.mxu0 }
 0x1e1   : > { %1999 = vst [vmem:[%s2321_s3 + $0x88] sm:$0xff] %v1482_v39 }
 0x200   : > { %v1835_v40 = vpop.f32.mrf.mxu1 }
 0x201   : > { %2008 = vst [vmem:[%s2321_s3 + $0xd0] sm:$0xff] %v1835_v40 }
 0x202   : > { %v1837_v41 = vpop.f32.mrf.mxu1 }
 0x203   : > { %2009 = vst [vmem:[%s2321_s3 + $0xd8] sm:$0xff] %v1837_v41 }
 0x211   : > { %v1622_v18 = vpop.f32.mrf.mxu0 }
 0x212   : > { %2002 = vst [vmem:[%s2321_s3 + $0xa0] sm:$0xff] %v1622_v18 }
 0x213   : > { %v1624_v42 = vpop.f32.mrf.mxu0 }
 0x214   : > { %2003 = vst [vmem:[%s2321_s3 + $0xa8] sm:$0xff] %v1624_v42 }
 0x228   : > { %v1977_v43 = vpop.f32.mrf.mxu1 }
 0x229   : > { %2012 = vst [vmem:[%s2321_s3 + $0xf0] sm:$0xff] %v1977_v43 }
 0x22a   : > { %v1979_v44 = vpop.f32.mrf.mxu1 }
 0x22b   : > { %2013 = vst [vmem:[%s2321_s3 + $0xf8] sm:$0xff] %v1979_v44  ;;  %2016 = vrot.lane.b32.xlu0 %v1979_v44, %s2253_s4 }
 0x23a   : > { %v1764_v45 = vpop.f32.mrf.mxu0 }
 0x23b   : > { %2006 = vst [vmem:[%s2321_s3 + $0xc0] sm:$0xff] %v1764_v45 }
 0x23c   : > { %v1766_v46 = vpop.f32.mrf.mxu0 }
 0x23d   : > { %2007 = vst [vmem:[%s2321_s3 + $0xc8] sm:$0xff] %v1766_v46 }
 0x262   : > { %v1906_v47 = vpop.f32.mrf.mxu0 }
 0x263   : > { %2010 = vst [vmem:[%s2321_s3 + $0xe0] sm:$0xff] %v1906_v47 }
 0x264   : > { %v1908_v48 = vpop.f32.mrf.mxu0 }
 0x265   : > { %2011 = vst [vmem:[%s2321_s3 + $0xe8] sm:$0xff] %v1908_v48 }
 0x29d   : > { %v2017_v49 = vpop.permute.xlu0 %2016 }
 0x29e   : > { %2019 = vst.msk [vmem:[#allocation2 + $0x8] sm:$0xff] %vm842_vm1, %v2017_v49 }
 0x29f PF: > { %s13_s11 = sadd.s32 1, %s2247_s11   ;;  %s2433_s9 = smov %s2243_s10 }
 0x2a0   : > { %p10_p3 = scmp.ge.s32.totalorder %s13_s11, 4   ;;  %s2434_s10 = smov %s2436_s13 }
 0x2a2   :  { %12 = sbr.rel (!%p10_p3) target bundleno = 2 (0x2), region = 67 }
 0x2a7   :  { %2049 = vsyncpa [#allocation4], 1 }
 0x2a8   :  { %2051 = vsyncpa [#allocation4 + $0x1], 1 }

</bundles_post_ra>
